<compile_context>
chip_gen: v7x
topology: tpu7x:2x2x1
jax: 0.10.0
libtpu: 0.0.40
codegen_flags: <defaults>
</compile_context>

<pallas_src>
import functools
import math

import jax
import jax.numpy as jnp
from jax import lax
from jax.experimental import pallas as pl
from jax.experimental.pallas import tpu as pltpu


def _gelu_exact(x):
    # F.gelu default = exact erf-based GELU
    return 0.5 * x * (1.0 + lax.erf(x * 0.7071067811865476))


def _head_group(num_heads, head_size):
    """Largest divisor g of num_heads with g * head_size <= 128 lanes."""
    best = 1
    for g in range(1, num_heads + 1):
        if num_heads % g == 0 and g * head_size <= 128:
            best = g
    return best


def bert_layer_kernel(
    x_ref, mask_ref,
    wq_ref, bq_ref, wk_ref, bk_ref, wv_ref, bv_ref, wo_ref, bo_ref,
    w1_ref, b1_ref, w2_ref, b2_ref, gamma_ref, beta_ref,
    out_ref,
    kt_scratch, v_scratch, ctx_scratch,
    *, num_heads, head_size, q_tile, ln_eps,
):
    qi = pl.program_id(1)
    S = v_scratch.shape[1]

    x_row = x_ref.at[0]                                   # (S, H) bf16 ref-view, no load

    # --- K / V for the whole sequence: computed once per batch row (first q tile) ---
    @pl.when(qi == 0)
    def _():
        x_full = x_row[...]                               # (S, H) bf16
        k = jnp.dot(x_full, wk_ref[...],
                    preferred_element_type=jnp.float32) + bk_ref[...]    # (S, H) f32
        v = jnp.dot(x_full, wv_ref[...],
                    preferred_element_type=jnp.float32) + bv_ref[...]
        kt = k.T                                          # one (S,H)->(H,S) transpose / row
        v_bf = v.astype(jnp.bfloat16)
        for h in range(num_heads):
            lo = h * head_size
            hi = lo + head_size
            kt_scratch[h] = kt[lo:hi, :].astype(jnp.bfloat16)            # (hd, S)
            v_scratch[h] = v_bf[:, lo:hi]                                # (S, hd)

    # --- Q for this query tile only (1/sqrt(hd) folded in once, after bias) ---
    row0 = pl.multiple_of(qi * q_tile, q_tile)
    x_q = x_row[pl.ds(row0, q_tile), :]                   # (TQ, H) bf16, tile-only load
    q = jnp.dot(x_q, wq_ref[...], preferred_element_type=jnp.float32) + bq_ref[...]
    q = q * (1.0 / math.sqrt(head_size))
    q_bf = q.astype(jnp.bfloat16)

    mask_b = jnp.broadcast_to(mask_ref[0], (q_tile, S))   # hoisted (1,S) -> (TQ,S)

    # --- per-head attention; contexts written group-wise into (TQ,H) bf16 scratch ---
    hpg = _head_group(num_heads, head_size)               # heads per full-lane group
    gw = hpg * head_size
    for g in range(num_heads // hpg):
        parts = []
        for hh in range(hpg):
            h = g * hpg + hh
            lo = h * head_size
            qh = q_bf[:, lo:lo + head_size]                              # (TQ, hd) bf16
            scores = jnp.dot(qh, kt_scratch[h],
                             preferred_element_type=jnp.float32)         # (TQ, S) f32
            scores = scores + mask_b
            scores = scores - jnp.max(scores, axis=-1, keepdims=True)
            p = jnp.exp(scores)                                          # un-normalized
            denom = jnp.sum(p, axis=-1, keepdims=True)                   # (TQ, 1) f32
            ctx = jnp.dot(p.astype(jnp.bfloat16), v_scratch[h],
                          preferred_element_type=jnp.float32)            # (TQ, hd) f32
            ctx = ctx * (1.0 / denom)                     # deferred softmax norm (exact)
            parts.append(ctx.astype(jnp.bfloat16))
        ctx_g = parts[0] if hpg == 1 else jnp.concatenate(parts, axis=-1)
        ctx_scratch[:, g * gw:(g + 1) * gw] = ctx_g       # full-lane-group store

    # --- attention output: ONE full-depth (TQ,H)@(H,H) Wo matmul ---
    attn = jnp.dot(ctx_scratch[...], wo_ref[...],
                   preferred_element_type=jnp.float32) + bo_ref[...]     # (TQ, H) f32

    # --- intermediate: Linear + exact GELU ---
    inter = jnp.dot(attn.astype(jnp.bfloat16), w1_ref[...],
                    preferred_element_type=jnp.float32) + b1_ref[...]
    inter = _gelu_exact(inter)

    # --- output: Linear + residual(attn) + LayerNorm (all f32) ---
    ffn = jnp.dot(inter.astype(jnp.bfloat16), w2_ref[...],
                  preferred_element_type=jnp.float32) + b2_ref[...]
    ffn = ffn + attn                                      # residual is attention_output

    mean = jnp.mean(ffn, axis=-1, keepdims=True)
    var = jnp.mean((ffn - mean) ** 2, axis=-1, keepdims=True)
    normed = (ffn - mean) * lax.rsqrt(var + ln_eps)
    out_ref[0] = normed * gamma_ref[...] + beta_ref[...]


def _pick_q_tile(S):
    # 256 is the v7x-safe default (64 MiB VMEM); on v5e/v6e (128 MiB) pass
    # q_tile=512 explicitly when S % 512 == 0 for fewer grid steps.
    for cand in (256, 128, 64, 32, 16, 8):
        if S % cand == 0:
            return cand
    return S   # tiny / odd sequence: one tile


def bert_layer(x, mask, params, *, num_heads, head_size, ln_eps=1e-12, q_tile=None):
    """x: (B, S, H) f32/bf16; mask: (B, 1, S) additive key-padding mask."""
    B, S, H = x.shape
    assert mask.shape == (B, 1, S)
    if q_tile is None:
        q_tile = _pick_q_tile(S)
    assert S % q_tile == 0
    n_q = S // q_tile

    x_bf = x.astype(jnp.bfloat16)         # all consumers are bf16 MXU operands
    mask = mask.astype(jnp.float32)

    # Weights / biases never change across the grid: single-buffer them.
    def w_spec(arr):
        return pl.BlockSpec(arr.shape, lambda b, q: (0, 0),
                            pipeline_mode=pl.Buffered(1))

    in_specs = [
        pl.BlockSpec((1, S, H), lambda b, q: (b, 0, 0)),   # x (full sequence per batch row)
        pl.BlockSpec((1, 1, S), lambda b, q: (b, 0, 0)),   # additive key mask
        w_spec(params["wq"]), w_spec(params["bq"]),
        w_spec(params["wk"]), w_spec(params["bk"]),
        w_spec(params["wv"]), w_spec(params["bv"]),
        w_spec(params["wo"]), w_spec(params["bo"]),
        w_spec(params["w1"]), w_spec(params["b1"]),
        w_spec(params["w2"]), w_spec(params["b2"]),
        w_spec(params["gamma"]), w_spec(params["beta"]),
    ]

    kernel = functools.partial(
        bert_layer_kernel,
        num_heads=num_heads, head_size=head_size, q_tile=q_tile, ln_eps=ln_eps,
    )

    # TODO(synk): on v7x (2 TCs) with B == 1, split the K/V projection into its
    #             own pallas_call so the q axis has no scratch carry and can be
    #             marked "parallel" for megacore sharding.
    return pl.pallas_call(
        kernel,
        out_shape=jax.ShapeDtypeStruct((B, S, H), jnp.float32),
        grid_spec=pltpu.PrefetchScalarGridSpec(
            num_scalar_prefetch=0,
            grid=(B, n_q),
            in_specs=in_specs,
            out_specs=pl.BlockSpec((1, q_tile, H), lambda b, q: (b, q, 0)),
            scratch_shapes=[
                pltpu.VMEM((num_heads, head_size, S), jnp.bfloat16),   # K^T per head
                pltpu.VMEM((num_heads, S, head_size), jnp.bfloat16),   # V per head
                pltpu.VMEM((q_tile, H), jnp.bfloat16),                 # per-tile context
            ],
        ),
        compiler_params=pltpu.CompilerParams(
            # batch is independent (megacore-shardable); q tiles carry K/V scratch.
            dimension_semantics=("parallel", "arbitrary"),
            vmem_limit_bytes=56 * 1024 * 1024,   # headroom under v7x's 64 MiB VMEM
        ),
    )(x_bf, mask, *[params[k] for k in
                    ("wq", "bq", "wk", "bk", "wv", "bv", "wo", "bo",
                     "w1", "b1", "w2", "b2", "gamma", "beta")])


def init_params(key, hidden, intermediate):
    keys = jax.random.split(key, 14)
    std = 0.02
    f32, bf16 = jnp.float32, jnp.bfloat16
    rnd = lambda k, shp, s=std: jax.random.normal(k, shp, f32) * s
    return {
        # matrices stored bf16 (MXU operands); biases / LN params stay f32
        "wq": rnd(keys[0], (hidden, hidden)).astype(bf16),
        "wk": rnd(keys[1], (hidden, hidden)).astype(bf16),
        "wv": rnd(keys[2], (hidden, hidden)).astype(bf16),
        "wo": rnd(keys[3], (hidden, hidden)).astype(bf16),
        "w1": rnd(keys[4], (hidden, intermediate)).astype(bf16),
        "w2": rnd(keys[5], (intermediate, hidden)).astype(bf16),
        "bq": rnd(keys[6], (1, hidden)),
        "bk": rnd(keys[7], (1, hidden)),
        "bv": rnd(keys[8], (1, hidden)),
        "bo": rnd(keys[9], (1, hidden)),
        "b1": rnd(keys[10], (1, intermediate)),
        "b2": rnd(keys[11], (1, hidden)),
        "gamma": 1.0 + rnd(keys[12], (1, hidden)),
        "beta": rnd(keys[13], (1, hidden)),
    }


def bert_layer_ref(x, mask, params, *, num_heads, head_size, ln_eps=1e-12):
    """Pure-JAX f32 reference matching the PyTorch spec (residual = attn, one LN)."""
    B, S, H = x.shape
    f32 = jnp.float32
    wq, wk, wv, wo = (params[k].astype(f32) for k in ("wq", "wk", "wv", "wo"))
    w1, w2 = params["w1"].astype(f32), params["w2"].astype(f32)
    q = x @ wq + params["bq"]
    k = x @ wk + params["bk"]
    v = x @ wv + params["bv"]
    q = q.reshape(B, S, num_heads, head_size).transpose(0, 2, 1, 3)
    k = k.reshape(B, S, num_heads, head_size).transpose(0, 2, 1, 3)
    v = v.reshape(B, S, num_heads, head_size).transpose(0, 2, 1, 3)
    scores = jnp.einsum("bhqd,bhkd->bhqk", q, k) / math.sqrt(head_size)
    scores = scores + mask[:, :, None, :]          # (B,1,S) -> (B,1,1,S)
    probs = jax.nn.softmax(scores, axis=-1)
    ctx = jnp.einsum("bhqk,bhkd->bhqd", probs, v)
    ctx = ctx.transpose(0, 2, 1, 3).reshape(B, S, H)
    attn = ctx @ wo + params["bo"]
    inter = jax.nn.gelu(attn @ w1 + params["b1"], approximate=False)
    ffn = inter @ w2 + params["b2"] + attn
    mean = jnp.mean(ffn, axis=-1, keepdims=True)
    var = jnp.mean((ffn - mean) ** 2, axis=-1, keepdims=True)
    return (ffn - mean) / jnp.sqrt(var + ln_eps) * params["gamma"] + params["beta"]


if __name__ == "__main__":
    # Small but multi-tile: q_tile=8 with S=16 exercises the qi==0 K/V scratch
    # reuse across query tiles and the grouped-head context stores.
    B, S, H = 2, 16, 32
    num_heads, head_size = 4, 8
    intermediate = 64

    key = jax.random.PRNGKey(0)
    kx, kp = jax.random.split(key, 2)

    x = jax.random.normal(kx, (B, S, H), jnp.float32)
    # additive key-padding mask: mask out last three key positions for batch element 1
    mask = jnp.zeros((B, 1, S), jnp.float32)
    mask = mask.at[1, :, -3:].set(-1e9)

    params = init_params(kp, H, intermediate)

    out = bert_layer(x, mask, params, num_heads=num_heads, head_size=head_size, q_tile=8)
    out = jax.block_until_ready(out)

    ref = bert_layer_ref(x, mask, params, num_heads=num_heads, head_size=head_size)
    assert out.shape == (B, S, H)
    # bf16 matmul operands (f32 accumulation) -> small but nonzero error
    max_err = float(jnp.max(jnp.abs(out - ref)))
    assert jnp.allclose(out, ref, atol=2e-2, rtol=2e-2), f"mismatch vs reference: {max_err}"

    print("KERNEL_OK")
</pallas_src>

<mosaic_0001>
module attributes {stable_mosaic.version = 11 : i64} {
  func.func @bert_layer_kernel(%arg0: i32, %arg1: i32, %arg2: memref<1x16x32xbf16, #tpu.memory_space<vmem>>, %arg3: memref<1x1x16xf32, #tpu.memory_space<vmem>>, %arg4: memref<32x32xbf16, #tpu.memory_space<vmem>>, %arg5: memref<1x32xf32, #tpu.memory_space<vmem>>, %arg6: memref<32x32xbf16, #tpu.memory_space<vmem>>, %arg7: memref<1x32xf32, #tpu.memory_space<vmem>>, %arg8: memref<32x32xbf16, #tpu.memory_space<vmem>>, %arg9: memref<1x32xf32, #tpu.memory_space<vmem>>, %arg10: memref<32x32xbf16, #tpu.memory_space<vmem>>, %arg11: memref<1x32xf32, #tpu.memory_space<vmem>>, %arg12: memref<32x64xbf16, #tpu.memory_space<vmem>>, %arg13: memref<1x64xf32, #tpu.memory_space<vmem>>, %arg14: memref<64x32xbf16, #tpu.memory_space<vmem>>, %arg15: memref<1x32xf32, #tpu.memory_space<vmem>>, %arg16: memref<1x32xf32, #tpu.memory_space<vmem>>, %arg17: memref<1x32xf32, #tpu.memory_space<vmem>>, %arg18: memref<1x8x32xf32, #tpu.memory_space<vmem>>, %arg19: memref<4x8x16xbf16, #tpu.memory_space<vmem>>, %arg20: memref<4x16x8xbf16, #tpu.memory_space<vmem>>, %arg21: memref<8x32xbf16, #tpu.memory_space<vmem>>) attributes {dimension_semantics = [#tpu.dimension_semantics<parallel>, #tpu.dimension_semantics<arbitrary>], iteration_bounds = array<i64: 2, 2>, scalar_prefetch = 0 : i64, scratch_operands = 3 : i64, tpu.core_type = #tpu.core_type<tc>, window_params = [{transform_indices = @transform_0, window_bounds = array<i64: 1, 16, 32>}, {transform_indices = @transform_1, window_bounds = array<i64: 1, 1, 16>}, {pipeline_mode = #tpu.pipeline_mode<synchronous>, transform_indices = @transform_2, window_bounds = array<i64: 32, 32>}, {pipeline_mode = #tpu.pipeline_mode<synchronous>, transform_indices = @transform_3, window_bounds = array<i64: 1, 32>}, {pipeline_mode = #tpu.pipeline_mode<synchronous>, transform_indices = @transform_4, window_bounds = array<i64: 32, 32>}, {pipeline_mode = #tpu.pipeline_mode<synchronous>, transform_indices = @transform_5, window_bounds = array<i64: 1, 32>}, {pipeline_mode = #tpu.pipeline_mode<synchronous>, transform_indices = @transform_6, window_bounds = array<i64: 32, 32>}, {pipeline_mode = #tpu.pipeline_mode<synchronous>, transform_indices = @transform_7, window_bounds = array<i64: 1, 32>}, {pipeline_mode = #tpu.pipeline_mode<synchronous>, transform_indices = @transform_8, window_bounds = array<i64: 32, 32>}, {pipeline_mode = #tpu.pipeline_mode<synchronous>, transform_indices = @transform_9, window_bounds = array<i64: 1, 32>}, {pipeline_mode = #tpu.pipeline_mode<synchronous>, transform_indices = @transform_10, window_bounds = array<i64: 32, 64>}, {pipeline_mode = #tpu.pipeline_mode<synchronous>, transform_indices = @transform_11, window_bounds = array<i64: 1, 64>}, {pipeline_mode = #tpu.pipeline_mode<synchronous>, transform_indices = @transform_12, window_bounds = array<i64: 64, 32>}, {pipeline_mode = #tpu.pipeline_mode<synchronous>, transform_indices = @transform_13, window_bounds = array<i64: 1, 32>}, {pipeline_mode = #tpu.pipeline_mode<synchronous>, transform_indices = @transform_14, window_bounds = array<i64: 1, 32>}, {pipeline_mode = #tpu.pipeline_mode<synchronous>, transform_indices = @transform_15, window_bounds = array<i64: 1, 32>}, {transform_indices = @transform_16, window_bounds = array<i64: 1, 8, 32>}]} {
    %c0_i32 = arith.constant 0 : i32
    %0 = arith.cmpi eq, %arg1, %c0_i32 : i32
    %1 = arith.extui %0 : i1 to i32
    %c0_i32_0 = arith.constant 0 : i32
    %c0_i32_1 = arith.constant 0 : i32
    %2 = arith.cmpi ne, %1, %c0_i32_1 : i32
    scf.if %2 {
      %161 = arith.index_cast %c0_i32_0 : i32 to index
      %c0_88 = arith.constant 0 : index
      %c0_89 = arith.constant 0 : index
      %162 = vector.load %arg2[%161, %c0_88, %c0_89] : memref<1x16x32xbf16, #tpu.memory_space<vmem>>, vector<1x16x32xbf16>
      %163 = vector.shape_cast %162 : vector<1x16x32xbf16> to vector<16x32xbf16>
      %c0_90 = arith.constant 0 : index
      %c0_91 = arith.constant 0 : index
      %164 = vector.load %arg6[%c0_90, %c0_91] : memref<32x32xbf16, #tpu.memory_space<vmem>>, vector<32x32xbf16>
      %cst_92 = arith.constant dense<0.000000e+00> : vector<16x32xf32>
      %165 = tpu.matmul %163, %164, %cst_92 {dimension_numbers = #tpu.dot_dimension_numbers<[1], [0], [0], [1], [0, 0, 1, 1], [], []>} : vector<16x32xbf16>, vector<32x32xbf16>, vector<16x32xf32> -> vector<16x32xf32>
      %c0_93 = arith.constant 0 : index
      %c0_94 = arith.constant 0 : index
      %166 = vector.load %arg7[%c0_93, %c0_94] : memref<1x32xf32, #tpu.memory_space<vmem>>, vector<1x32xf32>
      %167 = vector.broadcast %166 : vector<1x32xf32> to vector<16x32xf32>
      %168 = arith.addf %165, %167 : vector<16x32xf32>
      %c0_95 = arith.constant 0 : index
      %c0_96 = arith.constant 0 : index
      %169 = vector.load %arg8[%c0_95, %c0_96] : memref<32x32xbf16, #tpu.memory_space<vmem>>, vector<32x32xbf16>
      %cst_97 = arith.constant dense<0.000000e+00> : vector<16x32xf32>
      %170 = tpu.matmul %163, %169, %cst_97 {dimension_numbers = #tpu.dot_dimension_numbers<[1], [0], [0], [1], [0, 0, 1, 1], [], []>} : vector<16x32xbf16>, vector<32x32xbf16>, vector<16x32xf32> -> vector<16x32xf32>
      %c0_98 = arith.constant 0 : index
      %c0_99 = arith.constant 0 : index
      %171 = vector.load %arg9[%c0_98, %c0_99] : memref<1x32xf32, #tpu.memory_space<vmem>>, vector<1x32xf32>
      %172 = vector.broadcast %171 : vector<1x32xf32> to vector<16x32xf32>
      %173 = arith.addf %170, %172 : vector<16x32xf32>
      %174 = tpu.transpose %168, [1, 0] : vector<16x32xf32> -> vector<32x16xf32>
      %175 = arith.truncf %173 : vector<16x32xf32> to vector<16x32xbf16>
      %176 = vector.extract_strided_slice %174 {offsets = [0, 0], sizes = [8, 16], strides = [1, 1]} : vector<32x16xf32> to vector<8x16xf32>
      %177 = arith.truncf %176 : vector<8x16xf32> to vector<8x16xbf16>
      %c0_100 = arith.constant 0 : index
      %c0_101 = arith.constant 0 : index
      %c0_102 = arith.constant 0 : index
      %178 = vector.load %arg19[%c0_100, %c0_101, %c0_102] : memref<4x8x16xbf16, #tpu.memory_space<vmem>>, vector<1x8x16xbf16>
      %179 = vector.shape_cast %178 : vector<1x8x16xbf16> to vector<8x16xbf16>
      %180 = vector.shape_cast %177 : vector<8x16xbf16> to vector<1x8x16xbf16>
      tpu.vector_store %arg19[%c0_100, %c0_101, %c0_102], %180 {strides = array<i32>} : memref<4x8x16xbf16, #tpu.memory_space<vmem>>, vector<1x8x16xbf16>,
      %181 = vector.extract_strided_slice %175 {offsets = [0, 0], sizes = [16, 8], strides = [1, 1]} : vector<16x32xbf16> to vector<16x8xbf16>
      %c0_103 = arith.constant 0 : index
      %c0_104 = arith.constant 0 : index
      %c0_105 = arith.constant 0 : index
      %182 = vector.load %arg20[%c0_103, %c0_104, %c0_105] : memref<4x16x8xbf16, #tpu.memory_space<vmem>>, vector<1x16x8xbf16>
      %183 = vector.shape_cast %182 : vector<1x16x8xbf16> to vector<16x8xbf16>
      %184 = vector.shape_cast %181 : vector<16x8xbf16> to vector<1x16x8xbf16>
      tpu.vector_store %arg20[%c0_103, %c0_104, %c0_105], %184 {strides = array<i32>} : memref<4x16x8xbf16, #tpu.memory_space<vmem>>, vector<1x16x8xbf16>,
      %185 = vector.extract_strided_slice %174 {offsets = [8, 0], sizes = [8, 16], strides = [1, 1]} : vector<32x16xf32> to vector<8x16xf32>
      %186 = arith.truncf %185 : vector<8x16xf32> to vector<8x16xbf16>
      %c1_106 = arith.constant 1 : index
      %c0_107 = arith.constant 0 : index
      %c0_108 = arith.constant 0 : index
      %187 = vector.load %arg19[%c1_106, %c0_107, %c0_108] : memref<4x8x16xbf16, #tpu.memory_space<vmem>>, vector<1x8x16xbf16>
      %188 = vector.shape_cast %187 : vector<1x8x16xbf16> to vector<8x16xbf16>
      %189 = vector.shape_cast %186 : vector<8x16xbf16> to vector<1x8x16xbf16>
      tpu.vector_store %arg19[%c1_106, %c0_107, %c0_108], %189 {strides = array<i32>} : memref<4x8x16xbf16, #tpu.memory_space<vmem>>, vector<1x8x16xbf16>,
      %190 = vector.extract_strided_slice %175 {offsets = [0, 8], sizes = [16, 8], strides = [1, 1]} : vector<16x32xbf16> to vector<16x8xbf16>
      %c1_109 = arith.constant 1 : index
      %c0_110 = arith.constant 0 : index
      %c0_111 = arith.constant 0 : index
      %191 = vector.load %arg20[%c1_109, %c0_110, %c0_111] : memref<4x16x8xbf16, #tpu.memory_space<vmem>>, vector<1x16x8xbf16>
      %192 = vector.shape_cast %191 : vector<1x16x8xbf16> to vector<16x8xbf16>
      %193 = vector.shape_cast %190 : vector<16x8xbf16> to vector<1x16x8xbf16>
      tpu.vector_store %arg20[%c1_109, %c0_110, %c0_111], %193 {strides = array<i32>} : memref<4x16x8xbf16, #tpu.memory_space<vmem>>, vector<1x16x8xbf16>,
      %194 = vector.extract_strided_slice %174 {offsets = [16, 0], sizes = [8, 16], strides = [1, 1]} : vector<32x16xf32> to vector<8x16xf32>
      %195 = arith.truncf %194 : vector<8x16xf32> to vector<8x16xbf16>
      %c2_112 = arith.constant 2 : index
      %c0_113 = arith.constant 0 : index
      %c0_114 = arith.constant 0 : index
      %196 = vector.load %arg19[%c2_112, %c0_113, %c0_114] : memref<4x8x16xbf16, #tpu.memory_space<vmem>>, vector<1x8x16xbf16>
      %197 = vector.shape_cast %196 : vector<1x8x16xbf16> to vector<8x16xbf16>
      %198 = vector.shape_cast %195 : vector<8x16xbf16> to vector<1x8x16xbf16>
      tpu.vector_store %arg19[%c2_112, %c0_113, %c0_114], %198 {strides = array<i32>} : memref<4x8x16xbf16, #tpu.memory_space<vmem>>, vector<1x8x16xbf16>,
      %199 = vector.extract_strided_slice %175 {offsets = [0, 16], sizes = [16, 8], strides = [1, 1]} : vector<16x32xbf16> to vector<16x8xbf16>
      %c2_115 = arith.constant 2 : index
      %c0_116 = arith.constant 0 : index
      %c0_117 = arith.constant 0 : index
      %200 = vector.load %arg20[%c2_115, %c0_116, %c0_117] : memref<4x16x8xbf16, #tpu.memory_space<vmem>>, vector<1x16x8xbf16>
      %201 = vector.shape_cast %200 : vector<1x16x8xbf16> to vector<16x8xbf16>
      %202 = vector.shape_cast %199 : vector<16x8xbf16> to vector<1x16x8xbf16>
      tpu.vector_store %arg20[%c2_115, %c0_116, %c0_117], %202 {strides = array<i32>} : memref<4x16x8xbf16, #tpu.memory_space<vmem>>, vector<1x16x8xbf16>,
      %203 = vector.extract_strided_slice %174 {offsets = [24, 0], sizes = [8, 16], strides = [1, 1]} : vector<32x16xf32> to vector<8x16xf32>
      %204 = arith.truncf %203 : vector<8x16xf32> to vector<8x16xbf16>
      %c3_118 = arith.constant 3 : index
      %c0_119 = arith.constant 0 : index
      %c0_120 = arith.constant 0 : index
      %205 = vector.load %arg19[%c3_118, %c0_119, %c0_120] : memref<4x8x16xbf16, #tpu.memory_space<vmem>>, vector<1x8x16xbf16>
      %206 = vector.shape_cast %205 : vector<1x8x16xbf16> to vector<8x16xbf16>
      %207 = vector.shape_cast %204 : vector<8x16xbf16> to vector<1x8x16xbf16>
      tpu.vector_store %arg19[%c3_118, %c0_119, %c0_120], %207 {strides = array<i32>} : memref<4x8x16xbf16, #tpu.memory_space<vmem>>, vector<1x8x16xbf16>,
      %208 = vector.extract_strided_slice %175 {offsets = [0, 24], sizes = [16, 8], strides = [1, 1]} : vector<16x32xbf16> to vector<16x8xbf16>
      %c3_121 = arith.constant 3 : index
      %c0_122 = arith.constant 0 : index
      %c0_123 = arith.constant 0 : index
      %209 = vector.load %arg20[%c3_121, %c0_122, %c0_123] : memref<4x16x8xbf16, #tpu.memory_space<vmem>>, vector<1x16x8xbf16>
      %210 = vector.shape_cast %209 : vector<1x16x8xbf16> to vector<16x8xbf16>
      %211 = vector.shape_cast %208 : vector<16x8xbf16> to vector<1x16x8xbf16>
      tpu.vector_store %arg20[%c3_121, %c0_122, %c0_123], %211 {strides = array<i32>} : memref<4x16x8xbf16, #tpu.memory_space<vmem>>, vector<1x16x8xbf16>,
    } else {
    }
    %c8_i32 = arith.constant 8 : i32
    %3 = arith.muli %arg1, %c8_i32 : i32
    %4 = tpu.assume_multiple %3, 8 : i32
    %c0_i32_2 = arith.constant 0 : i32
    %c0_i32_3 = arith.constant 0 : i32
    %c0_i32_4 = arith.constant 0 : i32
    %5 = tpu.memref_slice %arg2[%c0_i32_2, %c0_i32_3, %c0_i32_4] : memref<1x16x32xbf16, #tpu.memory_space<vmem>> -> memref<1x16x32xbf16, #tpu.memory_space<vmem>>
    %6 = tpu.memref_squeeze %5 : memref<1x16x32xbf16, #tpu.memory_space<vmem>> -> memref<16x32xbf16, #tpu.memory_space<vmem>>
    %7 = arith.index_cast %4 : i32 to index
    %c0 = arith.constant 0 : index
    %8 = vector.load %6[%7, %c0] : memref<16x32xbf16, #tpu.memory_space<vmem>>, vector<8x32xbf16>
    %c0_5 = arith.constant 0 : index
    %c0_6 = arith.constant 0 : index
    %9 = vector.load %arg4[%c0_5, %c0_6] : memref<32x32xbf16, #tpu.memory_space<vmem>>, vector<32x32xbf16>
    %cst = arith.constant dense<0.000000e+00> : vector<8x32xf32>
    %10 = tpu.matmul %8, %9, %cst {dimension_numbers = #tpu.dot_dimension_numbers<[1], [0], [0], [1], [0, 0, 1, 1], [], []>} : vector<8x32xbf16>, vector<32x32xbf16>, vector<8x32xf32> -> vector<8x32xf32>
    %c0_7 = arith.constant 0 : index
    %c0_8 = arith.constant 0 : index
    %11 = vector.load %arg5[%c0_7, %c0_8] : memref<1x32xf32, #tpu.memory_space<vmem>>, vector<1x32xf32>
    %12 = vector.broadcast %11 : vector<1x32xf32> to vector<8x32xf32>
    %13 = arith.addf %10, %12 : vector<8x32xf32>
    %cst_9 = arith.constant 0.353553385 : f32
    %14 = vector.broadcast %cst_9 : f32 to vector<8x32xf32>
    %15 = arith.mulf %13, %14 : vector<8x32xf32>
    %16 = arith.truncf %15 : vector<8x32xf32> to vector<8x32xbf16>
    %c0_10 = arith.constant 0 : index
    %c0_11 = arith.constant 0 : index
    %c0_12 = arith.constant 0 : index
    %17 = vector.load %arg3[%c0_10, %c0_11, %c0_12] : memref<1x1x16xf32, #tpu.memory_space<vmem>>, vector<1x1x16xf32>
    %18 = vector.shape_cast %17 : vector<1x1x16xf32> to vector<1x16xf32>
    %19 = vector.shape_cast %18 : vector<1x16xf32> to vector<1x16xf32>
    %20 = vector.broadcast %19 : vector<1x16xf32> to vector<8x16xf32>
    %21 = vector.extract_strided_slice %16 {offsets = [0, 0], sizes = [8, 8], strides = [1, 1]} : vector<8x32xbf16> to vector<8x8xbf16>
    %c0_13 = arith.constant 0 : index
    %c0_14 = arith.constant 0 : index
    %c0_15 = arith.constant 0 : index
    %22 = vector.load %arg19[%c0_13, %c0_14, %c0_15] : memref<4x8x16xbf16, #tpu.memory_space<vmem>>, vector<1x8x16xbf16>
    %23 = vector.shape_cast %22 : vector<1x8x16xbf16> to vector<8x16xbf16>
    %cst_16 = arith.constant dense<0.000000e+00> : vector<8x16xf32>
    %24 = tpu.matmul %21, %23, %cst_16 {dimension_numbers = #tpu.dot_dimension_numbers<[1], [0], [0], [1], [0, 0, 1, 1], [], []>} : vector<8x8xbf16>, vector<8x16xbf16>, vector<8x16xf32> -> vector<8x16xf32>
    %25 = arith.addf %24, %20 : vector<8x16xf32>
    %cst_17 = arith.constant dense<0xFF800000> : vector<8xf32>
    %26 = vector.multi_reduction <maximumf>, %25, %cst_17 [1] : vector<8x16xf32> to vector<8xf32>
    %27 = vector.shape_cast %26 : vector<8xf32> to vector<8x1xf32>
    %28 = vector.broadcast %27 : vector<8x1xf32> to vector<8x16xf32>
    %29 = arith.subf %25, %28 : vector<8x16xf32>
    %30 = math.exp %29 : vector<8x16xf32>
    %cst_18 = arith.constant dense<0.000000e+00> : vector<8xf32>
    %31 = vector.multi_reduction <add>, %30, %cst_18 [1] : vector<8x16xf32> to vector<8xf32>
    %32 = vector.shape_cast %31 : vector<8xf32> to vector<8x1xf32>
    %33 = arith.truncf %30 : vector<8x16xf32> to vector<8x16xbf16>
    %c0_19 = arith.constant 0 : index
    %c0_20 = arith.constant 0 : index
    %c0_21 = arith.constant 0 : index
    %34 = vector.load %arg20[%c0_19, %c0_20, %c0_21] : memref<4x16x8xbf16, #tpu.memory_space<vmem>>, vector<1x16x8xbf16>
    %35 = vector.shape_cast %34 : vector<1x16x8xbf16> to vector<16x8xbf16>
    %cst_22 = arith.constant dense<0.000000e+00> : vector<8x8xf32>
    %36 = tpu.matmul %33, %35, %cst_22 {dimension_numbers = #tpu.dot_dimension_numbers<[1], [0], [0], [1], [0, 0, 1, 1], [], []>} : vector<8x16xbf16>, vector<16x8xbf16>, vector<8x8xf32> -> vector<8x8xf32>
    %cst_23 = arith.constant 1.000000e+00 : f32
    %37 = vector.broadcast %cst_23 : f32 to vector<8x1xf32>
    %38 = arith.divf %37, %32 : vector<8x1xf32>
    %39 = vector.broadcast %38 : vector<8x1xf32> to vector<8x8xf32>
    %40 = arith.mulf %36, %39 : vector<8x8xf32>
    %41 = arith.truncf %40 : vector<8x8xf32> to vector<8x8xbf16>
    %42 = vector.extract_strided_slice %16 {offsets = [0, 8], sizes = [8, 8], strides = [1, 1]} : vector<8x32xbf16> to vector<8x8xbf16>
    %c1 = arith.constant 1 : index
    %c0_24 = arith.constant 0 : index
    %c0_25 = arith.constant 0 : index
    %43 = vector.load %arg19[%c1, %c0_24, %c0_25] : memref<4x8x16xbf16, #tpu.memory_space<vmem>>, vector<1x8x16xbf16>
    %44 = vector.shape_cast %43 : vector<1x8x16xbf16> to vector<8x16xbf16>
    %cst_26 = arith.constant dense<0.000000e+00> : vector<8x16xf32>
    %45 = tpu.matmul %42, %44, %cst_26 {dimension_numbers = #tpu.dot_dimension_numbers<[1], [0], [0], [1], [0, 0, 1, 1], [], []>} : vector<8x8xbf16>, vector<8x16xbf16>, vector<8x16xf32> -> vector<8x16xf32>
    %46 = arith.addf %45, %20 : vector<8x16xf32>
    %cst_27 = arith.constant dense<0xFF800000> : vector<8xf32>
    %47 = vector.multi_reduction <maximumf>, %46, %cst_27 [1] : vector<8x16xf32> to vector<8xf32>
    %48 = vector.shape_cast %47 : vector<8xf32> to vector<8x1xf32>
    %49 = vector.broadcast %48 : vector<8x1xf32> to vector<8x16xf32>
    %50 = arith.subf %46, %49 : vector<8x16xf32>
    %51 = math.exp %50 : vector<8x16xf32>
    %cst_28 = arith.constant dense<0.000000e+00> : vector<8xf32>
    %52 = vector.multi_reduction <add>, %51, %cst_28 [1] : vector<8x16xf32> to vector<8xf32>
    %53 = vector.shape_cast %52 : vector<8xf32> to vector<8x1xf32>
    %54 = arith.truncf %51 : vector<8x16xf32> to vector<8x16xbf16>
    %c1_29 = arith.constant 1 : index
    %c0_30 = arith.constant 0 : index
    %c0_31 = arith.constant 0 : index
    %55 = vector.load %arg20[%c1_29, %c0_30, %c0_31] : memref<4x16x8xbf16, #tpu.memory_space<vmem>>, vector<1x16x8xbf16>
    %56 = vector.shape_cast %55 : vector<1x16x8xbf16> to vector<16x8xbf16>
    %cst_32 = arith.constant dense<0.000000e+00> : vector<8x8xf32>
    %57 = tpu.matmul %54, %56, %cst_32 {dimension_numbers = #tpu.dot_dimension_numbers<[1], [0], [0], [1], [0, 0, 1, 1], [], []>} : vector<8x16xbf16>, vector<16x8xbf16>, vector<8x8xf32> -> vector<8x8xf32>
    %cst_33 = arith.constant 1.000000e+00 : f32
    %58 = vector.broadcast %cst_33 : f32 to vector<8x1xf32>
    %59 = arith.divf %58, %53 : vector<8x1xf32>
    %60 = vector.broadcast %59 : vector<8x1xf32> to vector<8x8xf32>
    %61 = arith.mulf %57, %60 : vector<8x8xf32>
    %62 = arith.truncf %61 : vector<8x8xf32> to vector<8x8xbf16>
    %63 = vector.extract_strided_slice %16 {offsets = [0, 16], sizes = [8, 8], strides = [1, 1]} : vector<8x32xbf16> to vector<8x8xbf16>
    %c2 = arith.constant 2 : index
    %c0_34 = arith.constant 0 : index
    %c0_35 = arith.constant 0 : index
    %64 = vector.load %arg19[%c2, %c0_34, %c0_35] : memref<4x8x16xbf16, #tpu.memory_space<vmem>>, vector<1x8x16xbf16>
    %65 = vector.shape_cast %64 : vector<1x8x16xbf16> to vector<8x16xbf16>
    %cst_36 = arith.constant dense<0.000000e+00> : vector<8x16xf32>
    %66 = tpu.matmul %63, %65, %cst_36 {dimension_numbers = #tpu.dot_dimension_numbers<[1], [0], [0], [1], [0, 0, 1, 1], [], []>} : vector<8x8xbf16>, vector<8x16xbf16>, vector<8x16xf32> -> vector<8x16xf32>
    %67 = arith.addf %66, %20 : vector<8x16xf32>
    %cst_37 = arith.constant dense<0xFF800000> : vector<8xf32>
    %68 = vector.multi_reduction <maximumf>, %67, %cst_37 [1] : vector<8x16xf32> to vector<8xf32>
    %69 = vector.shape_cast %68 : vector<8xf32> to vector<8x1xf32>
    %70 = vector.broadcast %69 : vector<8x1xf32> to vector<8x16xf32>
    %71 = arith.subf %67, %70 : vector<8x16xf32>
    %72 = math.exp %71 : vector<8x16xf32>
    %cst_38 = arith.constant dense<0.000000e+00> : vector<8xf32>
    %73 = vector.multi_reduction <add>, %72, %cst_38 [1] : vector<8x16xf32> to vector<8xf32>
    %74 = vector.shape_cast %73 : vector<8xf32> to vector<8x1xf32>
    %75 = arith.truncf %72 : vector<8x16xf32> to vector<8x16xbf16>
    %c2_39 = arith.constant 2 : index
    %c0_40 = arith.constant 0 : index
    %c0_41 = arith.constant 0 : index
    %76 = vector.load %arg20[%c2_39, %c0_40, %c0_41] : memref<4x16x8xbf16, #tpu.memory_space<vmem>>, vector<1x16x8xbf16>
    %77 = vector.shape_cast %76 : vector<1x16x8xbf16> to vector<16x8xbf16>
    %cst_42 = arith.constant dense<0.000000e+00> : vector<8x8xf32>
    %78 = tpu.matmul %75, %77, %cst_42 {dimension_numbers = #tpu.dot_dimension_numbers<[1], [0], [0], [1], [0, 0, 1, 1], [], []>} : vector<8x16xbf16>, vector<16x8xbf16>, vector<8x8xf32> -> vector<8x8xf32>
    %cst_43 = arith.constant 1.000000e+00 : f32
    %79 = vector.broadcast %cst_43 : f32 to vector<8x1xf32>
    %80 = arith.divf %79, %74 : vector<8x1xf32>
    %81 = vector.broadcast %80 : vector<8x1xf32> to vector<8x8xf32>
    %82 = arith.mulf %78, %81 : vector<8x8xf32>
    %83 = arith.truncf %82 : vector<8x8xf32> to vector<8x8xbf16>
    %84 = vector.extract_strided_slice %16 {offsets = [0, 24], sizes = [8, 8], strides = [1, 1]} : vector<8x32xbf16> to vector<8x8xbf16>
    %c3 = arith.constant 3 : index
    %c0_44 = arith.constant 0 : index
    %c0_45 = arith.constant 0 : index
    %85 = vector.load %arg19[%c3, %c0_44, %c0_45] : memref<4x8x16xbf16, #tpu.memory_space<vmem>>, vector<1x8x16xbf16>
    %86 = vector.shape_cast %85 : vector<1x8x16xbf16> to vector<8x16xbf16>
    %cst_46 = arith.constant dense<0.000000e+00> : vector<8x16xf32>
    %87 = tpu.matmul %84, %86, %cst_46 {dimension_numbers = #tpu.dot_dimension_numbers<[1], [0], [0], [1], [0, 0, 1, 1], [], []>} : vector<8x8xbf16>, vector<8x16xbf16>, vector<8x16xf32> -> vector<8x16xf32>
    %88 = arith.addf %87, %20 : vector<8x16xf32>
    %cst_47 = arith.constant dense<0xFF800000> : vector<8xf32>
    %89 = vector.multi_reduction <maximumf>, %88, %cst_47 [1] : vector<8x16xf32> to vector<8xf32>
    %90 = vector.shape_cast %89 : vector<8xf32> to vector<8x1xf32>
    %91 = vector.broadcast %90 : vector<8x1xf32> to vector<8x16xf32>
    %92 = arith.subf %88, %91 : vector<8x16xf32>
    %93 = math.exp %92 : vector<8x16xf32>
    %cst_48 = arith.constant dense<0.000000e+00> : vector<8xf32>
    %94 = vector.multi_reduction <add>, %93, %cst_48 [1] : vector<8x16xf32> to vector<8xf32>
    %95 = vector.shape_cast %94 : vector<8xf32> to vector<8x1xf32>
    %96 = arith.truncf %93 : vector<8x16xf32> to vector<8x16xbf16>
    %c3_49 = arith.constant 3 : index
    %c0_50 = arith.constant 0 : index
    %c0_51 = arith.constant 0 : index
    %97 = vector.load %arg20[%c3_49, %c0_50, %c0_51] : memref<4x16x8xbf16, #tpu.memory_space<vmem>>, vector<1x16x8xbf16>
    %98 = vector.shape_cast %97 : vector<1x16x8xbf16> to vector<16x8xbf16>
    %cst_52 = arith.constant dense<0.000000e+00> : vector<8x8xf32>
    %99 = tpu.matmul %96, %98, %cst_52 {dimension_numbers = #tpu.dot_dimension_numbers<[1], [0], [0], [1], [0, 0, 1, 1], [], []>} : vector<8x16xbf16>, vector<16x8xbf16>, vector<8x8xf32> -> vector<8x8xf32>
    %cst_53 = arith.constant 1.000000e+00 : f32
    %100 = vector.broadcast %cst_53 : f32 to vector<8x1xf32>
    %101 = arith.divf %100, %95 : vector<8x1xf32>
    %102 = vector.broadcast %101 : vector<8x1xf32> to vector<8x8xf32>
    %103 = arith.mulf %99, %102 : vector<8x8xf32>
    %104 = arith.truncf %103 : vector<8x8xf32> to vector<8x8xbf16>
    %105 = tpu.concatenate %41, %62, %83, %104 in 1 : vector<8x8xbf16>, vector<8x8xbf16>, vector<8x8xbf16>, vector<8x8xbf16> -> vector<8x32xbf16>
    %c0_54 = arith.constant 0 : index
    %c0_55 = arith.constant 0 : index
    %106 = vector.load %arg21[%c0_54, %c0_55] : memref<8x32xbf16, #tpu.memory_space<vmem>>, vector<8x32xbf16>
    tpu.vector_store %arg21[%c0_54, %c0_55], %105 {strides = array<i32>} : memref<8x32xbf16, #tpu.memory_space<vmem>>, vector<8x32xbf16>,
    %c0_56 = arith.constant 0 : index
    %c0_57 = arith.constant 0 : index
    %107 = vector.load %arg21[%c0_56, %c0_57] : memref<8x32xbf16, #tpu.memory_space<vmem>>, vector<8x32xbf16>
    %c0_58 = arith.constant 0 : index
    %c0_59 = arith.constant 0 : index
    %108 = vector.load %arg10[%c0_58, %c0_59] : memref<32x32xbf16, #tpu.memory_space<vmem>>, vector<32x32xbf16>
    %cst_60 = arith.constant dense<0.000000e+00> : vector<8x32xf32>
    %109 = tpu.matmul %107, %108, %cst_60 {dimension_numbers = #tpu.dot_dimension_numbers<[1], [0], [0], [1], [0, 0, 1, 1], [], []>} : vector<8x32xbf16>, vector<32x32xbf16>, vector<8x32xf32> -> vector<8x32xf32>
    %c0_61 = arith.constant 0 : index
    %c0_62 = arith.constant 0 : index
    %110 = vector.load %arg11[%c0_61, %c0_62] : memref<1x32xf32, #tpu.memory_space<vmem>>, vector<1x32xf32>
    %111 = vector.broadcast %110 : vector<1x32xf32> to vector<8x32xf32>
    %112 = arith.addf %109, %111 : vector<8x32xf32>
    %113 = arith.truncf %112 : vector<8x32xf32> to vector<8x32xbf16>
    %c0_63 = arith.constant 0 : index
    %c0_64 = arith.constant 0 : index
    %114 = vector.load %arg12[%c0_63, %c0_64] : memref<32x64xbf16, #tpu.memory_space<vmem>>, vector<32x64xbf16>
    %cst_65 = arith.constant dense<0.000000e+00> : vector<8x64xf32>
    %115 = tpu.matmul %113, %114, %cst_65 {dimension_numbers = #tpu.dot_dimension_numbers<[1], [0], [0], [1], [0, 0, 1, 1], [], []>} : vector<8x32xbf16>, vector<32x64xbf16>, vector<8x64xf32> -> vector<8x64xf32>
    %c0_66 = arith.constant 0 : index
    %c0_67 = arith.constant 0 : index
    %116 = vector.load %arg13[%c0_66, %c0_67] : memref<1x64xf32, #tpu.memory_space<vmem>>, vector<1x64xf32>
    %117 = vector.broadcast %116 : vector<1x64xf32> to vector<8x64xf32>
    %118 = arith.addf %115, %117 : vector<8x64xf32>
    %cst_68 = arith.constant 5.000000e-01 : f32
    %119 = vector.broadcast %cst_68 : f32 to vector<8x64xf32>
    %120 = arith.mulf %119, %118 : vector<8x64xf32>
    %cst_69 = arith.constant 0.707106769 : f32
    %121 = vector.broadcast %cst_69 : f32 to vector<8x64xf32>
    %122 = arith.mulf %118, %121 : vector<8x64xf32>
    %123 = math.erf %122 : vector<8x64xf32>
    %cst_70 = arith.constant 1.000000e+00 : f32
    %124 = vector.broadcast %cst_70 : f32 to vector<8x64xf32>
    %125 = arith.addf %124, %123 : vector<8x64xf32>
    %126 = arith.mulf %120, %125 : vector<8x64xf32>
    %127 = arith.truncf %126 : vector<8x64xf32> to vector<8x64xbf16>
    %c0_71 = arith.constant 0 : index
    %c0_72 = arith.constant 0 : index
    %128 = vector.load %arg14[%c0_71, %c0_72] : memref<64x32xbf16, #tpu.memory_space<vmem>>, vector<64x32xbf16>
    %cst_73 = arith.constant dense<0.000000e+00> : vector<8x32xf32>
    %129 = tpu.matmul %127, %128, %cst_73 {dimension_numbers = #tpu.dot_dimension_numbers<[1], [0], [0], [1], [0, 0, 1, 1], [], []>} : vector<8x64xbf16>, vector<64x32xbf16>, vector<8x32xf32> -> vector<8x32xf32>
    %c0_74 = arith.constant 0 : index
    %c0_75 = arith.constant 0 : index
    %130 = vector.load %arg15[%c0_74, %c0_75] : memref<1x32xf32, #tpu.memory_space<vmem>>, vector<1x32xf32>
    %131 = vector.broadcast %130 : vector<1x32xf32> to vector<8x32xf32>
    %132 = arith.addf %129, %131 : vector<8x32xf32>
    %133 = arith.addf %132, %112 : vector<8x32xf32>
    %cst_76 = arith.constant dense<0.000000e+00> : vector<8xf32>
    %134 = vector.multi_reduction <add>, %133, %cst_76 [1] : vector<8x32xf32> to vector<8xf32>
    %135 = vector.shape_cast %134 : vector<8xf32> to vector<8x1xf32>
    %cst_77 = arith.constant 3.200000e+01 : f32
    %136 = vector.broadcast %cst_77 : f32 to vector<8x1xf32>
    %137 = arith.divf %135, %136 : vector<8x1xf32>
    %138 = vector.broadcast %137 : vector<8x1xf32> to vector<8x32xf32>
    %139 = arith.subf %133, %138 : vector<8x32xf32>
    %140 = arith.mulf %139, %139 : vector<8x32xf32>
    %cst_78 = arith.constant dense<0.000000e+00> : vector<8xf32>
    %141 = vector.multi_reduction <add>, %140, %cst_78 [1] : vector<8x32xf32> to vector<8xf32>
    %142 = vector.shape_cast %141 : vector<8xf32> to vector<8x1xf32>
    %cst_79 = arith.constant 3.200000e+01 : f32
    %143 = vector.broadcast %cst_79 : f32 to vector<8x1xf32>
    %144 = arith.divf %142, %143 : vector<8x1xf32>
    %145 = vector.broadcast %137 : vector<8x1xf32> to vector<8x32xf32>
    %146 = arith.subf %133, %145 : vector<8x32xf32>
    %cst_80 = arith.constant 9.99999996E-13 : f32
    %147 = vector.broadcast %cst_80 : f32 to vector<8x1xf32>
    %148 = arith.addf %144, %147 : vector<8x1xf32>
    %149 = math.rsqrt %148 : vector<8x1xf32>
    %150 = vector.broadcast %149 : vector<8x1xf32> to vector<8x32xf32>
    %151 = arith.mulf %146, %150 : vector<8x32xf32>
    %c0_81 = arith.constant 0 : index
    %c0_82 = arith.constant 0 : index
    %152 = vector.load %arg16[%c0_81, %c0_82] : memref<1x32xf32, #tpu.memory_space<vmem>>, vector<1x32xf32>
    %153 = vector.broadcast %152 : vector<1x32xf32> to vector<8x32xf32>
    %154 = arith.mulf %151, %153 : vector<8x32xf32>
    %c0_83 = arith.constant 0 : index
    %c0_84 = arith.constant 0 : index
    %155 = vector.load %arg17[%c0_83, %c0_84] : memref<1x32xf32, #tpu.memory_space<vmem>>, vector<1x32xf32>
    %156 = vector.broadcast %155 : vector<1x32xf32> to vector<8x32xf32>
    %157 = arith.addf %154, %156 : vector<8x32xf32>
    %c0_85 = arith.constant 0 : index
    %c0_86 = arith.constant 0 : index
    %c0_87 = arith.constant 0 : index
    %158 = vector.load %arg18[%c0_85, %c0_86, %c0_87] : memref<1x8x32xf32, #tpu.memory_space<vmem>>, vector<1x8x32xf32>
    %159 = vector.shape_cast %158 : vector<1x8x32xf32> to vector<8x32xf32>
    %160 = vector.shape_cast %157 : vector<8x32xf32> to vector<1x8x32xf32>
    tpu.vector_store %arg18[%c0_85, %c0_86, %c0_87], %160 {strides = array<i32>} : memref<1x8x32xf32, #tpu.memory_space<vmem>>, vector<1x8x32xf32>,
    return
  }
  func.func @transform_0(%arg0: i32, %arg1: i32) -> (i32, i32, i32) {
    %c0_i32 = arith.constant 0 : i32
    %c0_i32_0 = arith.constant 0 : i32
    %c0_i32_1 = arith.constant 0 : i32
    return %arg0, %c0_i32, %c0_i32_0 : i32, i32, i32
  }
  func.func @transform_1(%arg0: i32, %arg1: i32) -> (i32, i32, i32) {
    %c0_i32 = arith.constant 0 : i32
    %c0_i32_0 = arith.constant 0 : i32
    %c0_i32_1 = arith.constant 0 : i32
    return %arg0, %c0_i32, %c0_i32_0 : i32, i32, i32
  }
  func.func @transform_2(%arg0: i32, %arg1: i32) -> (i32, i32) {
    %c0_i32 = arith.constant 0 : i32
    %c0_i32_0 = arith.constant 0 : i32
    %c0_i32_1 = arith.constant 0 : i32
    return %c0_i32, %c0_i32_0 : i32, i32
  }
  func.func @transform_3(%arg0: i32, %arg1: i32) -> (i32, i32) {
    %c0_i32 = arith.constant 0 : i32
    %c0_i32_0 = arith.constant 0 : i32
    %c0_i32_1 = arith.constant 0 : i32
    return %c0_i32, %c0_i32_0 : i32, i32
  }
  func.func @transform_4(%arg0: i32, %arg1: i32) -> (i32, i32) {
    %c0_i32 = arith.constant 0 : i32
    %c0_i32_0 = arith.constant 0 : i32
    %c0_i32_1 = arith.constant 0 : i32
    return %c0_i32, %c0_i32_0 : i32, i32
  }
  func.func @transform_5(%arg0: i32, %arg1: i32) -> (i32, i32) {
    %c0_i32 = arith.constant 0 : i32
    %c0_i32_0 = arith.constant 0 : i32
    %c0_i32_1 = arith.constant 0 : i32
    return %c0_i32, %c0_i32_0 : i32, i32
  }
  func.func @transform_6(%arg0: i32, %arg1: i32) -> (i32, i32) {
    %c0_i32 = arith.constant 0 : i32
    %c0_i32_0 = arith.constant 0 : i32
    %c0_i32_1 = arith.constant 0 : i32
    return %c0_i32, %c0_i32_0 : i32, i32
  }
  func.func @transform_7(%arg0: i32, %arg1: i32) -> (i32, i32) {
    %c0_i32 = arith.constant 0 : i32
    %c0_i32_0 = arith.constant 0 : i32
    %c0_i32_1 = arith.constant 0 : i32
    return %c0_i32, %c0_i32_0 : i32, i32
  }
  func.func @transform_8(%arg0: i32, %arg1: i32) -> (i32, i32) {
    %c0_i32 = arith.constant 0 : i32
    %c0_i32_0 = arith.constant 0 : i32
    %c0_i32_1 = arith.constant 0 : i32
    return %c0_i32, %c0_i32_0 : i32, i32
  }
  func.func @transform_9(%arg0: i32, %arg1: i32) -> (i32, i32) {
    %c0_i32 = arith.constant 0 : i32
    %c0_i32_0 = arith.constant 0 : i32
    %c0_i32_1 = arith.constant 0 : i32
    return %c0_i32, %c0_i32_0 : i32, i32
  }
  func.func @transform_10(%arg0: i32, %arg1: i32) -> (i32, i32) {
    %c0_i32 = arith.constant 0 : i32
    %c0_i32_0 = arith.constant 0 : i32
    %c0_i32_1 = arith.constant 0 : i32
    return %c0_i32, %c0_i32_0 : i32, i32
  }
  func.func @transform_11(%arg0: i32, %arg1: i32) -> (i32, i32) {
    %c0_i32 = arith.constant 0 : i32
    %c0_i32_0 = arith.constant 0 : i32
    %c0_i32_1 = arith.constant 0 : i32
    return %c0_i32, %c0_i32_0 : i32, i32
  }
  func.func @transform_12(%arg0: i32, %arg1: i32) -> (i32, i32) {
    %c0_i32 = arith.constant 0 : i32
    %c0_i32_0 = arith.constant 0 : i32
    %c0_i32_1 = arith.constant 0 : i32
    return %c0_i32, %c0_i32_0 : i32, i32
  }
  func.func @transform_13(%arg0: i32, %arg1: i32) -> (i32, i32) {
    %c0_i32 = arith.constant 0 : i32
    %c0_i32_0 = arith.constant 0 : i32
    %c0_i32_1 = arith.constant 0 : i32
    return %c0_i32, %c0_i32_0 : i32, i32
  }
  func.func @transform_14(%arg0: i32, %arg1: i32) -> (i32, i32) {
    %c0_i32 = arith.constant 0 : i32
    %c0_i32_0 = arith.constant 0 : i32
    %c0_i32_1 = arith.constant 0 : i32
    return %c0_i32, %c0_i32_0 : i32, i32
  }
  func.func @transform_15(%arg0: i32, %arg1: i32) -> (i32, i32) {
    %c0_i32 = arith.constant 0 : i32
    %c0_i32_0 = arith.constant 0 : i32
    %c0_i32_1 = arith.constant 0 : i32
    return %c0_i32, %c0_i32_0 : i32, i32
  }
  func.func @transform_16(%arg0: i32, %arg1: i32) -> (i32, i32, i32) {
    %c0_i32 = arith.constant 0 : i32
    %c0_i32_0 = arith.constant 0 : i32
    return %arg0, %arg1, %c0_i32 : i32, i32, i32
  }
}

</mosaic_0001>

<bundles_post_ra>
// kernel: tpu_custom_call.1
= control target key start
LH: loop header
LB: loop body
LE: loop exit
PB: predicated region body
PF: predicated region fallthrough
CT: control target
= control target key end

     0   :  { %s2990_s0 = inlined_call_operand.vmem [shape: bf16[2,16,32], index: 0, kind: input, shape index: {}]   ;;  %s2991_s1 = inlined_call_operand.vmem [shape: f32[2,1,16], index: 1, kind: input, shape index: {}]   ;;  %s2992_s2 = inlined_call_operand.vmem [shape: bf16[32,32], index: 2, kind: input, shape index: {}]   ;;  %s2993_s3 = inlined_call_operand.hbm [shape: f32[1,32], index: 3, kind: input, shape index: {}]   ;;  %s2994_s4 = inlined_call_operand.vmem [shape: bf16[32,32], index: 4, kind: input, shape index: {}]   ;;  %s2995_s5 = inlined_call_operand.hbm [shape: f32[1,32], index: 5, kind: input, shape index: {}]   ;;  %s2996_s6 = inlined_call_operand.hbm [shape: bf16[32,32], index: 6, kind: input, shape index: {}]   ;;  %s2997_s7 = inlined_call_operand.hbm [shape: f32[1,32], index: 7, kind: input, shape index: {}]   ;;  %s2998_s8 = inlined_call_operand.hbm [shape: bf16[32,32], index: 8, kind: input, shape index: {}]   ;;  %s2999_s9 = inlined_call_operand.hbm [shape: f32[1,32], index: 9, kind: input, shape index: {}]   ;;  %s3000_s10 = inlined_call_operand.vmem [shape: bf16[32,64], index: 10, kind: input, shape index: {}]   ;;  %s3001_s11 = inlined_call_operand.vmem [shape: f32[1,64], index: 11, kind: input, shape index: {}]   ;;  %s3002_s12 = inlined_call_operand.vmem [shape: bf16[64,32], index: 12, kind: input, shape index: {}]   ;;  %s3003_s13 = inlined_call_operand.vmem [shape: f32[1,32], index: 13, kind: input, shape index: {}]   ;;  %s3004_s14 = inlined_call_operand.vmem [shape: f32[1,32], index: 14, kind: input, shape index: {}]   ;;  %s3005_s15 = inlined_call_operand.vmem [shape: f32[1,32], index: 15, kind: input, shape index: {}]   ;;  %s3006_s16 = inlined_call_operand.hbm [shape: f32[2,16,32], index: 16, kind: output, shape index: {}]  }
   0x1   :  { %3023 = sst [smem:[#allocation32_spill]] %s2990_s0 }
   0x2   :  { %3024 = sst [smem:[#allocation33_spill]] %s2993_s3 }
   0x3   :  { %3025 = sst [smem:[#allocation34_spill]] %s2995_s5 }
   0x4   :  { %3026 = sst [smem:[#allocation35_spill]] %s2997_s7 }
   0x5   :  { %3027 = sst [smem:[#allocation36_spill]] %s3001_s11 }
   0x6   :  { %3028 = sst [smem:[#allocation37_spill]] %s3003_s13 }
   0x7   :  { %3029 = sst [smem:[#allocation38_spill]] %s3004_s14 }
   0x8   :  { %3030 = sst [smem:[#allocation39_spill]] %s3005_s15 }
   0x9   :  { %3031 = sst [smem:[#allocation40_spill]] %s3006_s16 }
   0xa   :  { %21 = vsyncpa [#allocation6], 0 }
   0xb   :  { %22 = vsyncpa [#allocation9], 0 }
   0xc   :  { %23 = vsyncpa [#allocation12], 0 }
   0xd   :  { %24 = vsyncpa [#allocation15], 0 }
   0xe   :  { %25 = vsyncpa [#allocation7], 0 }
   0xf   :  { %27 = vsyncpa [#allocation7 + $0x1], 0  ;;  %s2559_s21 = smov 0   ;;  %s2561_s22 = smov 0  }
  0x10   :  { %s2563_s23 = smov 0   ;;  %s2565_s24 = smov 0  }
  0x11   :  { %s2567_s25 = smov 0   ;;  %s2569_s26 = smov 0  }
  0x12   :  { %s2571_s27 = smov 0   ;;  %s2573_s28 = smov 0  }
  0x13 LB: > { %3032 = sst [smem:[#allocation22_spill]] %s2422_s21  ;;  %s1787_s29 = sadd.s32 4294967295, %s2450_s28   ;;  %s2450_s28 = sphi %s2573_s28, %s33_s28   ;;  %s2446_s27 = sphi %s2571_s27, %s3071_s27   ;;  %s2442_s26 = sphi %s2569_s26, %s3070_s26   ;;  %s2438_s25 = sphi %s2567_s25, %s3075_s25   ;;  %s2434_s24 = sphi %s2565_s24, %s3068_s24   ;;  %s2430_s23 = sphi %s2563_s23, %s3074_s23   ;;  %s2426_s22 = sphi %s2561_s22, %s3073_s22   ;;  %s2422_s21 = sphi %s2559_s21, %s3072_s21  }
  0x14   : > { %3033 = sst [smem:[#allocation23_spill]] %s2430_s23  ;;  %s1788_s30 = sadd.s32 4294967294, %s2450_s28  }
  0x15   : > { %3034 = sst [smem:[#allocation24_spill]] %s2442_s26  ;;  %s42_s0 = sadd.s32 1, %s2442_s26 }
  0x16   : > { %3035 = sst [smem:[#allocation25_spill]] %s2446_s27  ;;  %s45_s17 = sadd.s32 1, %s2446_s27 }
  0x17   : > { %3036 = sst [smem:[#allocation26_spill]] %s2450_s28  ;;  %p43_p0 = scmp.ge.s32.totalorder %s42_s0, 2 }
  0x18   : > { %s400_s18 = sadd.s32 1, %s2430_s23  ;;  %p410_p1 = scmp.ne.s32.totalorder %s2430_s23, %s2426_s22 }
  0x19   : > { %p411_p2 = scmp.eq.s32.totalorder %s1787_s29, 3  ;;  %s3077_s0 = smov (%p43_p0, %s42_s0), 0 }
  0x1a   : > { %3037 = sst [smem:[#allocation27_spill]] %s3077_s0  ;;  %s3079_s17 = smov (!%p43_p0, %s45_s17), %s2446_s27 }
  0x1b   : > { %s396_s19 = ssub.s32 %s2442_s26, %s3077_s0  ;;  %p2611_p3 = por %p411_p2, %p410_p1 }
  0x1c   : > { %p47_p4 = scmp.ge.s32.totalorder %s3079_s17, 2  ;;  %p416_p5 = scmp.ne.s32.totalorder %s2426_s22, %s2422_s21 }
  0x1d   : > { %s3038_s20 = scalar_select %p2611_p3, 1, 0 }
  0x1e   : > { %p417_p6 = scmp.eq.s32.totalorder %s1788_s30, 3  ;;  %p1789_p7 = scmp.ge.s32.totalorder %s2450_s28, 1 }
  0x1f   : > { %3039 = sst [smem:[#allocation28_spill]] %s3038_s20  ;;  %s3081_s17 = smov (%p47_p4, %s3079_s17), 0 }
  0x20   : > { %3040 = sst [smem:[#allocation29_spill]] %s3081_s17  ;;  %p2620_p8 = por %p417_p6, %p416_p5 }
  0x21   : > { %p424_p9 = scmp.lt.s32.totalorder %s2450_s28, 5  ;;  %s395_s15 = ssub.s32 %s2446_s27, %s3081_s17 }
  0x22   : > { %s3041_s16 = scalar_select %p2620_p8, 1, 0 }
  0x23   : > { %s397_s14 = sor.u32 %s396_s19, %s395_s15  ;;  %p2627_p10 = pnand %p1789_p7, %p424_p9 }
  0x24   : > { %3042 = sst [smem:[#allocation30_spill]] %s3041_s16  ;;  %p398_p11 = scmp.eq.s32.totalorder %s397_s14, 0 }
  0x25   : > { %s3043_s0 = scalar_select %p2627_p10, 1, 0 }
  0x26   : > { %p2631_p12 = scmp.eq.s32.totalorder %s1787_s29, 0  ;;  %p2016_p13 = pneg %p2627_p10 }
  0x27   : > { %s2638_s30 = scalar_select %p398_p11, %s2430_s23, %s400_s18  }
  0x28   : > { %s3044_s26 = scalar_select %p2631_p12, 1, 0 }
  0x29   : > { %3045 = sst [smem:[#allocation31_spill]] %s2638_s30  ;;  %p2642_p0 = pnand %p2631_p12, %p2016_p13 }
  0x2a   : > { %s2452_s15 = smov [#allocation8]   ;;  %s2453_s17 = smov [#allocation11]  }
  0x2b   : > { %s454_s19 = sshll.u32 %s2452_s15, 4  ;;  %s478_s14 = sshll.u32 %s2453_s17, 4  ;;  %s455_s19 = int_to_ptr.vmem [resolvable:$true] %s454_s19  ;;  %s479_s14 = int_to_ptr.vmem [resolvable:$true] %s478_s14 }
  0x2c   : > { %s3047_s5 = sld [smem:[#allocation34_spill]]  ;;  %p2654_p2 = pneg %p2642_p0 }
  0x32   : > { %s2172_s21 = scalar_lea.hbm %s3047_s5, 16 }
  0x33   : > { %p2173_p1 = scmp.ne.s32.totalorder %s3047_s5, %s2172_s21  ;;  %p2179_p6 = scmp.lt.u32.totalorder %s2172_s21, %s3047_s5 }
  0x35   : > { %p2175_p4 = pnand %p2654_p2, %p2173_p1 }
  0x37   : > { %p2176_p5 = pneg %p2175_p4 }
  0x39   : > { %p2181_p7 = pnand %p2179_p6, %p2176_p5 }
  0x3b   : > { %2184 = shalt.err (!%p2181_p7)
}
  0x3c   : > { %s2185_s27 = scalar_lea.vmem %s455_s19, 16  ;;  %s2192_s28 = scalar_lea.vmem %s455_s19, 32 }
  0x3d   : > { %p2186_p9 = scmp.ne.s32.totalorder %s455_s19, %s2185_s27  ;;  %p2193_p8 = scmp.lt.s32.totalorder %s455_s19, %s455_s19 }
  0x3e   : > { %p2194_p3 = scmp.lt.s32.totalorder %s2192_s28, %s2185_s27 }
  0x3f   : > { %p2188_p11 = pnand %p2186_p9, %p2654_p2 }
  0x40   : > { %p2195_p12 = por %p2194_p3, %p2193_p8 }
  0x41   : > { %p2189_p13 = pneg %p2188_p11 }
  0x43   : > { %p2196_p10 = pnand %p2195_p12, %p2189_p13 }
  0x45   : > { %2199 = shalt.err (!%p2196_p10)
}
  0x46   : > { %2022 = dma.hbm_to_vmem [thread:$0]  (!%p2642_p0), %s3047_s5, 16, %s455_s19, [#allocation9]  }
  0x47   : > { %s3049_s7 = sld [smem:[#allocation35_spill]] }
  0x4d   : > { %s2200_s29 = scalar_lea.hbm %s3049_s7, 16 }
  0x4e   : > { %p2201_p1 = scmp.ne.s32.totalorder %s3049_s7, %s2200_s29  ;;  %p2207_p10 = scmp.lt.u32.totalorder %s2200_s29, %s3049_s7 }
  0x50   : > { %p2203_p3 = pnand %p2201_p1, %p2654_p2 }
  0x52   : > { %p2204_p8 = pneg %p2203_p3 }
  0x54   : > { %p2209_p12 = pnand %p2207_p10, %p2204_p8 }
  0x56   : > { %2212 = shalt.err (!%p2209_p12)
}
  0x57   : > { %s2213_s17 = scalar_lea.vmem %s479_s14, 16  ;;  %s2220_s19 = scalar_lea.vmem %s479_s14, 32 }
  0x58   : > { %p2214_p4 = scmp.ne.s32.totalorder %s479_s14, %s2213_s17  ;;  %p2221_p7 = scmp.lt.s32.totalorder %s479_s14, %s479_s14 }
  0x59   : > { %p2222_p9 = scmp.lt.s32.totalorder %s2220_s19, %s2213_s17 }
  0x5a   : > { %p2216_p5 = pnand %p2214_p4, %p2654_p2 }
  0x5b   : > { %p2223_p11 = por %p2222_p9, %p2221_p7 }
  0x5c   : > { %p2217_p6 = pneg %p2216_p5 }
  0x5e   : > { %p2224_p13 = pnand %p2223_p11, %p2217_p6 }
  0x60   : > { %2227 = shalt.err (!%p2224_p13)
}
  0x61   : > { %2028 = dma.hbm_to_vmem [thread:$0]  (!%p2642_p0), %s3049_s7, 16, %s479_s14, [#allocation12]  }
  0x62   : > { %s2454_s21 = smov [#allocation5]   ;;  %s2455_s29 = smov [#allocation10]  }
  0x63   : > { %s440_s30 = sshll.u32 %s2454_s21, 4  ;;  %s464_s15 = sshll.u32 %s2455_s29, 4  ;;  %s441_s30 = int_to_ptr.vmem [resolvable:$true] %s440_s30  ;;  %s465_s15 = int_to_ptr.vmem [resolvable:$true] %s464_s15 }
  0x64   : > { %s3050_s3 = sld [smem:[#allocation33_spill]] }
  0x6a   : > { %s2228_s5 = scalar_lea.hbm %s3050_s3, 16 }
  0x6b   : > { %p2229_p1 = scmp.ne.s32.totalorder %s3050_s3, %s2228_s5  ;;  %p2235_p10 = scmp.lt.u32.totalorder %s2228_s5, %s3050_s3 }
  0x6d   : > { %p2231_p3 = pnand %p2229_p1, %p2654_p2 }
  0x6f   : > { %p2232_p8 = pneg %p2231_p3 }
  0x71   : > { %p2237_p12 = pnand %p2235_p10, %p2232_p8 }
  0x73   : > { %2240 = shalt.err (!%p2237_p12)
}
  0x74   : > { %s2241_s14 = scalar_lea.vmem %s441_s30, 16  ;;  %s2248_s20 = scalar_lea.vmem %s441_s30, 32 }
  0x75   : > { %p2242_p4 = scmp.ne.s32.totalorder %s441_s30, %s2241_s14  ;;  %p2249_p7 = scmp.lt.s32.totalorder %s441_s30, %s441_s30 }
  0x76   : > { %p2250_p9 = scmp.lt.s32.totalorder %s2248_s20, %s2241_s14 }
  0x77   : > { %p2244_p5 = pnand %p2242_p4, %p2654_p2 }
  0x78   : > { %p2251_p11 = por %p2250_p9, %p2249_p7 }
  0x79   : > { %p2245_p6 = pneg %p2244_p5 }
  0x7b   : > { %p2252_p13 = pnand %p2251_p11, %p2245_p6 }
  0x7d   : > { %2255 = shalt.err (!%p2252_p13)
}
  0x7e   : > { %2019 = dma.hbm_to_vmem [thread:$0]  (!%p2642_p0), %s3050_s3, 16, %s441_s30, [#allocation6]  }
  0x7f   : > { %s2256_s27 = scalar_lea.hbm %s2996_s6, 256 }
  0x80   : > { %p2257_p1 = scmp.ne.s32.totalorder %s2996_s6, %s2256_s27  ;;  %p2263_p10 = scmp.lt.u32.totalorder %s2256_s27, %s2996_s6 }
  0x82   : > { %p2259_p3 = pnand %p2257_p1, %p2654_p2 }
  0x84   : > { %p2260_p8 = pneg %p2259_p3 }
  0x86   : > { %p2265_p12 = pnand %p2263_p10, %p2260_p8 }
  0x88   : > { %2268 = shalt.err (!%p2265_p12)
}
  0x89   : > { %s2269_s14 = scalar_lea.vmem %s465_s15, 256  ;;  %p2277_p7 = scmp.lt.s32.totalorder %s465_s15, %s465_s15 }
  0x8a   : > { %p2270_p4 = scmp.ne.s32.totalorder %s465_s15, %s2269_s14  ;;  %p2278_p9 = scmp.lt.s32.totalorder %s2269_s14, %s2269_s14 }
  0x8c   : > { %p2272_p5 = pnand %p2270_p4, %p2654_p2  ;;  %p2279_p11 = por %p2278_p9, %p2277_p7 }
  0x8e   : > { %p2273_p6 = pneg %p2272_p5 }
  0x90   : > { %p2280_p13 = pnand %p2279_p11, %p2273_p6 }
  0x92   : > { %2283 = shalt.err (!%p2280_p13)
}
  0x93   : > { %s2456_s30 = smov 64   ;;  %s2457_s20 = smov 4  }
  0x94   : > { %2025 = dma.hbm_to_vmem [thread:$0]  (!%p2642_p0), %s2996_s6, 256, %s465_s15, [#allocation9], %s2456_s30, %s2456_s30, %s2457_s20  }
  0x95   : > { %s2458_s5 = smov [#allocation13]   ;;  %s2459_s27 = smov [#allocation14]  }
  0x96   : > { %s488_s13 = sshll.u32 %s2458_s5, 4  ;;  %s502_s28 = sshll.u32 %s2459_s27, 4  ;;  %s489_s13 = int_to_ptr.vmem [resolvable:$true] %s488_s13  ;;  %s503_s28 = int_to_ptr.vmem [resolvable:$true] %s502_s28 }
  0x97   : > { %s2284_s23 = scalar_lea.hbm %s2998_s8, 256 }
  0x98   : > { %p2285_p1 = scmp.ne.s32.totalorder %s2998_s8, %s2284_s23  ;;  %p2291_p10 = scmp.lt.u32.totalorder %s2284_s23, %s2998_s8 }
  0x9a   : > { %p2287_p3 = pnand %p2285_p1, %p2654_p2 }
  0x9c   : > { %p2288_p8 = pneg %p2287_p3 }
  0x9e   : > { %p2293_p12 = pnand %p2291_p10, %p2288_p8 }
  0xa0   : > { %2296 = shalt.err (!%p2293_p12)
}
  0xa1   : > { %s2297_s15 = scalar_lea.vmem %s489_s13, 256  ;;  %p2305_p7 = scmp.lt.s32.totalorder %s489_s13, %s489_s13 }
  0xa2   : > { %p2298_p4 = scmp.ne.s32.totalorder %s489_s13, %s2297_s15  ;;  %p2306_p9 = scmp.lt.s32.totalorder %s2297_s15, %s2297_s15 }
  0xa4   : > { %p2300_p5 = pnand %p2298_p4, %p2654_p2  ;;  %p2307_p11 = por %p2306_p9, %p2305_p7 }
  0xa6   : > { %p2301_p6 = pneg %p2300_p5 }
  0xa8   : > { %p2308_p13 = pnand %p2307_p11, %p2301_p6 }
  0xaa   : > { %2311 = shalt.err (!%p2308_p13)
}
  0xab   : > { %2031 = dma.hbm_to_vmem [thread:$0]  (!%p2642_p0), %s2998_s8, 256, %s489_s13, [#allocation12], %s2456_s30, %s2456_s30, %s2457_s20  }
  0xac   : > { %s2312_s29 = scalar_lea.hbm %s2999_s9, 16 }
  0xad   : > { %p2313_p1 = scmp.ne.s32.totalorder %s2999_s9, %s2312_s29  ;;  %p2319_p10 = scmp.lt.u32.totalorder %s2312_s29, %s2999_s9 }
  0xaf   : > { %p2315_p3 = pnand %p2313_p1, %p2654_p2 }
  0xb1   : > { %p2316_p8 = pneg %p2315_p3 }
  0xb3   : > { %p2321_p12 = pnand %p2319_p10, %p2316_p8 }
  0xb5   : > { %2324 = shalt.err (!%p2321_p12)
}
  0xb6   : > { %s2325_s23 = scalar_lea.vmem %s503_s28, 16  ;;  %s2332_s30 = scalar_lea.vmem %s503_s28, 32 }
  0xb7   : > { %p2326_p4 = scmp.ne.s32.totalorder %s503_s28, %s2325_s23  ;;  %p2333_p7 = scmp.lt.s32.totalorder %s503_s28, %s503_s28 }
  0xb8   : > { %p2334_p9 = scmp.lt.s32.totalorder %s2332_s30, %s2325_s23 }
  0xb9   : > { %p2328_p5 = pnand %p2326_p4, %p2654_p2 }
  0xba   : > { %p2335_p11 = por %p2334_p9, %p2333_p7 }
  0xbb   : > { %p2329_p6 = pneg %p2328_p5 }
  0xbd   : > { %p2336_p13 = pnand %p2335_p11, %p2329_p6 }
  0xbf   : > { %2339 = shalt.err (!%p2336_p13)
}
  0xc0   : > { %2034 = dma.hbm_to_vmem [thread:$0]  (!%p2642_p0), %s2999_s9, 16, %s503_s28, [#allocation15]  }
  0xc1   : > { %p3051_p1 = scmp.ne.s32.totalorder %s3043_s0, 0 }
  0xc2   : > { %p3052_p3 = scmp.ne.s32.totalorder (!%p3051_p1), %s3044_s26, 0 }
  0xc3   : > { %547 = sbr.rel (%p3051_p1) target bundleno = 2956 (0xb8c), region = 84 }
  0xca   : > { %2401 = dma.done.wait (%p3052_p3), [#allocation6], 16  }
  0xcb   : > { %2403 = vsyncadd (%p3052_p3), [#allocation6], 4294967280 }
  0xcc   : > { %2405 = dma.done.wait (%p3052_p3), [#allocation9], 272  }
  0xcd   : > { %2407 = vsyncadd (%p3052_p3), [#allocation9], 4294967024 }
  0xce   : > { %2409 = dma.done.wait (%p3052_p3), [#allocation12], 272  }
  0xcf   : > { %2411 = vsyncadd (%p3052_p3), [#allocation12], 4294967024 }
  0xd0   : > { %2413 = dma.done.wait (%p3052_p3), [#allocation15], 16  }
  0xd1   : > { %2415 = vsyncadd (%p3052_p3), [#allocation15], 4294967280  ;;  %s617_s16 = sand.u32 1, %s2426_s22   ;;  %p620_p0 = scmp.lt.s32.totalorder %s2438_s25, 1 }
  0xd2   : > { %s2782_s0 = sshll.u32 %s617_s16, 3  ;;  %s3053_s7 = sld [smem:[#allocation32_spill]] }
  0xd3   : > { %s2785_s18 = scalar_select %p620_p0, %s2438_s25, 1 }
  0xd4   : > { %s619_s29 = scalar_lea.vmem [#allocation16], %s2782_s0  ;;  %p1807_p2 = scmp.ne.s32.totalorder %s2434_s24, 0 }
  0xd5   : > { %s1853_s28 = sshll.u32 %s2785_s18, 3  ;;  %s627_s26 = scalar_lea.vmem %s2991_s1, %s2785_s18  ;;  %v2137_v0 = vld [vmem:[#allocation10] sm:$0xff] (!%p1807_p2)   ;;  %v2460_v1 = vmov (!%p1807_p2), 0.0   ;;  %v2138_v2 = vld [vmem:[#allocation10 + $0x8] sm:$0xff] (!%p1807_p2)   ;;  %vm2461_vm0 = vmmov (!%p1807_p2), 0   ;;  %v2141_v5 = vld [vmem:[%s2994_s4 + $0x8] sm:$0xff] (!%p1807_p2)  }
  0xd6   : > { %632 = sbr.rel (%p1807_p2) target bundleno = 625 (0x271), region = 112  ;;  %1898 = vmatprep.subr.bf16.mxu1 (!%p1807_p2), %v2460_v1  ;;  %1890 = vmatprep.subr.bf16.mxu0 (!%p1807_p2), %v2460_v1  ;;  %v2140_v3 = vld [vmem:[%s2994_s4] sm:$0xff] (!%p1807_p2)   ;;  %vm663_vm1 = vcmask (!%p1807_p2), 261120   ;;  %v1813_v6 = vld [vmem:[#allocation11] ss:$0 sm:$0xff] (!%p1807_p2)  ;;  %vm808_vm2 = vcmask (!%p1807_p2), 64512  }
  0xd7   : > { %1899 = vmatpush3.bf16.msra.mxu1 (!%p1807_p2), %v2137_v0  ;;  %1902 = vmatprep.mubr.msk.bf16.mxu1 (!%p1807_p2), %vm2461_vm0, %v2460_v1  ;;  %s2462_s23 = smov (!%p1807_p2), 104   ;;  %s2463_s30 = smov (!%p1807_p2), 120   ;;  %v1808_v18 = vld [vmem:[#allocation8] ss:$0 sm:$0xff] (!%p1807_p2)  ;;  %vm806_vm3 = vcmask (!%p1807_p2), 125952  }
  0xd8   : > { %s2795_s11 = scalar_lea.vmem %s3053_s7, %s1853_s28  ;;  %1900 = vmatprep.subr.bf16.mxu1 (!%p1807_p2), %v2460_v1  ;;  %1894 = vmatprep.mubr.msk.bf16.mxu0 (!%p1807_p2), %vm2461_vm0, %v2460_v1  ;;  %s2464_s20 = smov (!%p1807_p2), 112  }
  0xd9   : > { %v2139_v4 = vld [vmem:[%s2795_s11] sm:$0xff] (!%p1807_p2)   ;;  %1891 = vmatpush3.bf16.msra.mxu0 (!%p1807_p2), %v2140_v3 }
  0xda   : > { %1892 = vmatprep.subr.bf16.mxu0 (!%p1807_p2), %v2460_v1 }
  0xdb   : > { %1901 = vmatpush3.bf16.msra.mxu1 (!%p1807_p2), %v2138_v2 }
  0xdd   : > { %1893 = vmatpush3.bf16.msra.mxu0 %v2141_v5 }
  0xde   : > { %1903 = vmatmul.mubr.msk.bf16.vlgmr.msra.gmra.mrb[0].mxu1 %vm663_vm1, %v2139_v4 }
  0xe0   : > { %1895 = vmatmul.mubr.msk.bf16.vlgmr.msra.gmra.mrb[0].mxu0 %vm663_vm1, %v2139_v4 }
 0x1b1   : > { %v765_v7 = vpop.f32.mrb[0].mxu1 }
 0x1b2   : > { %v1904_v8 = vpop.f32.mrb[1].mxu1  ;;  %v766_v10 = vadd.f32 %v1813_v6, %v765_v7 }
 0x1b3   : > { %v768_v9 = vpop.f32.mrb[2].mxu1  ;;  %v701_v13 = vpop.f32.mrb[0].mxu0 }
 0x1b4   : > { %v769_v11 = vadd.f32 %v1813_v6, %v768_v9  ;;  %v1905_v12 = vpop.f32.mrb[3].mxu1  ;;  %v1896_v14 = vpop.f32.mrb[1].mxu0  ;;  %v702_v19 = vadd.f32 %v1808_v18, %v701_v13 }
 0x1b5   : > { %v704_v16 = vpop.f32.mrb[2].mxu0 }
 0x1b6   : > { %v804_v15 = vpack.c.bf16 %v769_v11, %v766_v10  ;;  %v1897_v17 = vpop.f32.mrb[3].mxu0  ;;  %v705_v20 = vadd.f32 %v1808_v18, %v704_v16 }
 0x1b8   : > { %830 = vrot.lane.b32.xlu1 %v804_v15, %s2462_s23  ;;  %814 = vrot.lane.b32.xlu0 %v804_v15, %s2463_s30  ;;  %809 = vst.msk [vmem:[#allocation3] sm:$0xff] %vm808_vm2, %v804_v15 }
 0x1bc   : > { %822 = vrot.lane.b32.xlu0 %v804_v15, %s2464_s20 }
 0x1e1   : > { %772 = vxpose.xlu1.b32.start [1/2] (short) (narrow) %v702_v19, 32 }
 0x1e5   : > { %773 = vxpose.xlu1.b32.end [2/2] (short) (narrow) %v705_v20, 32 }
 0x22a   : > { %v831_v21 = vpop.permute.xlu1 %830  ;;  %v815_v22 = vpop.permute.xlu0 %814 }
 0x22b   : > { %834 = vst.msk [vmem:[#allocation3 + $0x18] sm:$0xff] %vm808_vm2, %v831_v21  ;;  %818 = vst.msk [vmem:[#allocation3 + $0x8] sm:$0xff] %vm808_vm2, %v815_v22 }
 0x22e   : > { %v823_v23 = vpop.permute.xlu0 %822 }
 0x22f   : > { %826 = vst.msk [vmem:[#allocation3 + $0x10] sm:$0xff] %vm808_vm2, %v823_v23 }
 0x261   : > { %v788_v24 = vpop.trf.xlu1 }
 0x262   : > { %v805_v25 = vpack.c.bf16 %v788_v24, %v788_v24 }
 0x264   : > { %807 = vst.msk [vmem:[#allocation2] sm:$0xf] %vm806_vm3, %v805_v25 }
 0x265   : > { %v789_v26 = vpop.trf.xlu1 }
 0x266   : > { %v810_v27 = vpack.c.bf16 %v789_v26, %v789_v26 }
 0x268   : > { %812 = vst.msk [vmem:[#allocation2 + $0x4] sm:$0xf] %vm806_vm3, %v810_v27 }
 0x269   : > { %v790_v28 = vpop.trf.xlu1 }
 0x26a   : > { %v819_v29 = vpack.c.bf16 %v790_v28, %v790_v28 }
 0x26c   : > { %821 = vst.msk [vmem:[#allocation2 + $0x8] sm:$0xf] %vm806_vm3, %v819_v29 }
 0x26d   : > { %v791_v30 = vpop.trf.xlu1 }
 0x26e   : > { %v827_v31 = vpack.c.bf16 %v791_v30, %v791_v30 }
 0x270   : > { %829 = vst.msk [vmem:[#allocation2 + $0xc] sm:$0xf] %vm806_vm3, %v827_v31 }
 0x271 PF: > { %v2142_v32 = vld [vmem:[%s2992_s2] sm:$0xff]   ;;  %v2465_v33 = vmov 0.0   ;;  %v2143_v34 = vld [vmem:[%s2992_s2 + $0x8] sm:$0xff]   ;;  %vm2466_vm4 = vmmov 0   ;;  %s1817_s3 = sshll.u32 %s2434_s24, 3  ;;  %vm864_vm5 = vcmask 261120  }
 0x272   : > { %1906 = vmatprep.subr.bf16.mxu0 %v2465_v33  ;;  %1914 = vmatprep.subr.bf16.mxu1 %v2465_v33  ;;  %s836_s21 = sshra.s32 %s1817_s3, 3  ;;  %v917_v36 = vld [vmem:[#allocation2] sm:$0xf]  ;;  %vm922_vm6 = vcmask 1043456   ;;  %v1819_v40 = vld [vmem:[#allocation5] ss:$0 sm:$0xff] }
 0x273   : > { %1907 = vmatpush3.bf16.msra.mxu0 %v2142_v32  ;;  %1910 = vmatprep.mubr.msk.bf16.mxu0 %vm2466_vm4, %v2465_v33  ;;  %s1818_s7 = sshll.u32 %s836_s21, 2  ;;  %v924_v37 = vsel %vm922_vm6, %v917_v36, 0  ;;  %v1136_v38 = vld [vmem:[#allocation2 + $0x8] sm:$0xf]  ;;  %vm918_vm7 = vcmask 64512   ;;  %s2468_s27 = smov 104  }
 0x274   : > { %1908 = vmatprep.subr.bf16.mxu0 %v2465_v33  ;;  %1916 = vmatprep.mubr.msk.bf16.mxu1 %vm2466_vm4, %v2465_v33  ;;  %s839_s5 = scalar_lea.vmem %s2795_s11, %s1818_s7  ;;  %v1143_v39 = vsel %vm922_vm6, %v1136_v38, 0  ;;  %s2467_s11 = smov 112   ;;  %v1823_v52 = vld [vmem:[%s627_s26] ss:$0 sm:$0xff]  ;;  %vm966_vm8 = vcmask 130048   ;;  %v977_v59 = vld [vmem:[#allocation3] sm:$0xff] }
 0x275   : > { %v840_v35 = vld [vmem:[%s839_s5] sm:$0xf]  ;;  %1915 = vmatpush3.bf16.msra.mxu1 %v924_v37  ;;  %s2469_s23 = smov 120   ;;  %v1026_v9 = vld [vmem:[#allocation2 + $0x4] sm:$0xf]  ;;  %v1087_v32 = vld [vmem:[#allocation3 + $0x8] sm:$0xff] }
 0x276   : > { %1920 = vmatprep.subr.bf16.mxu1 %v2465_v33  ;;  %v1034_v13 = vsel %vm922_vm6, %v1026_v9, 0  ;;  %s2470_s18 = smov 8   ;;  %s2471_s26 = smov 16   ;;  %vm1367_vm9 = vcmask 195584   ;;  %vm1371_vm10 = vcmask 257024   ;;  %vm1552_vm11 = vcmask 523264  }
 0x277   : > { %1909 = vmatpush3.bf16.msra.mxu0 %v2143_v34  ;;  %v1245_v48 = vld [vmem:[#allocation2 + $0xc] sm:$0xf]  ;;  %s2472_s13 = smov 24   ;;  %s3055_s20 = sld [smem:[#allocation37_spill]] }
 0x278   : > { %1938 = vmatprep.subr.bf16.mxu0 %v2465_v33  ;;  %v1252_v49 = vsel %vm922_vm6, %v1245_v48, 0  ;;  %s3056_s28 = sld [smem:[#allocation28_spill]]  ;;  %s3057_s21 = sld [smem:[#allocation38_spill]] }
 0x279   : > { %s1644_s17 = sshll.u32 %s619_s29, 4  ;;  %s2934_s17 = int_to_ptr.vmem [resolvable:$true] %s1644_s17 }
 0x27a   : > { %1911 = vmatmul.mubr.msk.bf16.vlgmr.msra.gmra.mrb[0].mxu0 %vm864_vm5, %v840_v35  ;;  %s2340_s30 = scalar_lea.vmem %s2934_s17, 128 }
 0x27b   : > { %1940 = vmatprep.mubr.msk.bf16.mxu0 %vm2466_vm4, %v2465_v33  ;;  %1939 = vmatpush3.bf16.msra.mxu0 %v1143_v39  ;;  %p2341_p8 = scmp.ne.s32.totalorder %s2934_s17, %s2340_s30 }
 0x27c   : > { %1950 = vmatprep.subr.bf16.mxu0 %v2465_v33 }
 0x27e   : > { %p3061_p10 = scmp.ne.s32.totalorder %s3056_s28, 0 }
 0x280   : > { %p2342_p12 = pnand %p2341_p8, %p3061_p10 }
 0x282   : > { %p2343_p4 = pneg %p2342_p12 }
 0x34d   : > { %v902_v41 = vpop.f32.mrb[0].mxu0 }
 0x34e   : > { %v903_v42 = vadd.f32 %v1819_v40, %v902_v41  ;;  %v1912_v43 = vpop.f32.mrb[1].mxu0 }
 0x34f   : > { %v905_v44 = vpop.f32.mrb[2].mxu0  ;;  %v1196_v43 = vld [vmem:[#allocation3 + $0x10] sm:$0xff] }
 0x350   : > { %v908_v45 = vmul.f32 0.35355338, %v903_v42  ;;  %v1913_v46 = vpop.f32.mrb[3].mxu0 }
 0x352   : > { %v909_v47 = vpack.c.bf16 %v908_v45, %v908_v45 }
 0x354   : > { %1137 = vrot.lane.b32.xlu1 %v909_v47, %s2467_s11  ;;  %1917 = vmatmul.mubr.msk.bf16.vlgmr.msra.gmra.mrb[0].mxu1 %vm918_vm7, %v909_v47  ;;  %s3058_s11 = sld [smem:[#allocation39_spill]] }
 0x355   : > { %1922 = vmatprep.mubr.msk.bf16.mxu1 %vm2466_vm4, %v2465_v33  ;;  %1921 = vmatpush3.bf16.msra.mxu1 %v977_v59 }
 0x356   : > { %1926 = vmatprep.subr.bf16.mxu1 %v2465_v33 }
 0x358   : > { %1246 = vrot.lane.b32.xlu1 %v909_v47, %s2468_s27 }
 0x3c6   : > { %v1138_v50 = vpop.permute.xlu1 %1137 }
 0x3c7   : > { %1941 = vmatmul.mubr.msk.bf16.vlgmr.msra.gmra.mrb[4].mxu0 %vm918_vm7, %v1138_v50 }
 0x3c8   : > { %1951 = vmatpush3.bf16.msra.mxu0 %v1252_v49  ;;  %1952 = vmatprep.mubr.msk.bf16.mxu0 %vm2466_vm4, %v2465_v33 }
 0x3c9   : > { %1962 = vmatprep.subr.bf16.mxu0 %v2465_v33 }
 0x3ca   : > { %v1247_v51 = vpop.permute.xlu1 %1246 }
 0x3cf   : > { %1953 = vmatmul.mubr.msk.bf16.vlgmr.msra.gmra.mrb[8].mxu0 %vm918_vm7, %v1247_v51 }
 0x3d0   : > { %1966 = vmatprep.mubr.msk.bf16.mxu0 %vm2466_vm4, %v2465_v33 }
 0x427   : > { %v960_v53 = vpop.f32.mrb[0].mxu1 }
 0x428   : > { %v961_v54 = vadd.f32 %v1823_v52, %v960_v53  ;;  %v1918_v55 = vpop.f32.mrb[1].mxu1 }
 0x429   : > { %v963_v56 = vpop.f32.mrb[2].mxu1 }
 0x42a   : > { %v1919_v57 = vpop.f32.mrb[3].mxu1  ;;  %v967_v58 = vsel %vm966_vm8, %v961_v54, -inf }
 0x42b   : > { %968 = vmax.xlane.f32.xlu0 %v967_v58 }
 0x441   : > { %1028 = vrot.lane.b32.xlu0 %v909_v47, %s2469_s23  ;;  %v1305_v47 = vld [vmem:[#allocation3 + $0x18] sm:$0xff] }
 0x49a   : > { %v1179_v60 = vpop.f32.mrb[4].mxu0 }
 0x49b   : > { %v1180_v61 = vadd.f32 %v1823_v52, %v1179_v60  ;;  %v1942_v62 = vpop.f32.mrb[5].mxu0 }
 0x49c   : > { %v1182_v63 = vpop.f32.mrb[6].mxu0 }
 0x49d   : > { %v1943_v0 = vpop.f32.mrb[7].mxu0  ;;  %v1185_v1 = vsel %vm966_vm8, %v1180_v61, -inf  ;;  %v2144_v63 = vld [vmem:[#allocation13] sm:$0xff]  }
 0x49e   : > { %1186 = vmax.xlane.f32.xlu0 %v1185_v1  ;;  %1963 = vmatpush3.bf16.msra.mxu0 %v2144_v63 }
 0x49f   : > { %1964 = vmatprep.subr.bf16.mxu0 %v2465_v33 }
 0x4a2   : > { %v1288_v2 = vpop.f32.mrb[8].mxu0 }
 0x4a3   : > { %v1954_v3 = vpop.f32.mrb[9].mxu0  ;;  %v1289_v26 = vadd.f32 %v1823_v52, %v1288_v2 }
 0x4a4   : > { %v1291_v4 = vpop.f32.mrb[10].mxu0  ;;  %v2145_v3 = vld [vmem:[#allocation13 + $0x8] sm:$0xff]  }
 0x4a5   : > { %v1955_v5 = vpop.f32.mrb[11].mxu0  ;;  %v1294_v29 = vsel %vm966_vm8, %v1289_v26, -inf  ;;  %1965 = vmatpush3.bf16.msra.mxu0 %v2145_v3 }
 0x4a6   : > { %1978 = vmatprep.subr.bf16.mxu0 %v2465_v33 }
 0x4b8   : > { %v969_v6 = vpop.xlane.xlu0 %968 }
 0x4b9   : > { %v970_v7 = vsub.f32 %v961_v54, %v969_v6 }
 0x4bb   : > { %v971_v8 = vmul.f32 1.442695, %v970_v7 }
 0x4bc   : > { %v1029_v14 = vpop.permute.xlu0 %1028 }
 0x4bd   : > { %2152 = vpow2.f32 %v971_v8  ;;  %v2146_v8 = vld [vmem:[%s3000_s10] sm:$0xff]  }
 0x4c7   : > { %v2153_v10 = vpop.eup %2152 }
 0x4c8   : > { %v973_v11 = vsel %vm966_vm8, %v2153_v10, 0.0  ;;  %v976_v12 = vpack.c.bf16 %v2153_v10, %v2153_v10 }
 0x4c9   : > { %974 = vadd.xlane.f32.xlu0 %v973_v11 }
 0x4ca   : > { %1923 = vmatmul.mubr.msk.bf16.vlgmr.msra.gmra.mrb[4].mxu1 %vm966_vm8, %v976_v12 }
 0x4cb   : > { %1927 = vmatpush3.bf16.msra.mxu1 %v1034_v13  ;;  %1928 = vmatprep.mubr.msk.bf16.mxu1 %vm2466_vm4, %v2465_v33 }
 0x4cc   : > { %1932 = vmatprep.subr.bf16.mxu1 %v2465_v33 }
 0x4d2   : > { %1929 = vmatmul.mubr.msk.bf16.vlgmr.msra.gmra.mrb[8].mxu1 %vm918_vm7, %v1029_v14 }
 0x4d3   : > { %1934 = vmatprep.mubr.msk.bf16.mxu1 %vm2466_vm4, %v2465_v33  ;;  %1933 = vmatpush3.bf16.msra.mxu1 %v1087_v32  ;;  %v2149_v32 = vld [vmem:[%s3002_s12 + $0x8] sm:$0xff]  }
 0x4d4   : > { %1944 = vmatprep.subr.bf16.mxu1 %v2465_v33 }
 0x52b   : > { %v1187_v15 = vpop.xlane.xlu0 %1186 }
 0x52c   : > { %v1188_v16 = vsub.f32 %v1180_v61, %v1187_v15 }
 0x52e   : > { %v1189_v19 = vmul.f32 1.442695, %v1188_v16 }
 0x530   : > { %2154 = vpow2.f32 %v1189_v19 }
 0x53a   : > { %v2155_v30 = vpop.eup %2154 }
 0x53b   : > { %v1191_v31 = vsel %vm966_vm8, %v2155_v30, 0.0  ;;  %v1194_v46 = vpack.c.bf16 %v2155_v30, %v2155_v30 }
 0x556   : > { %v975_v12 = vpop.xlane.xlu0 %974 }
 0x59d   : > { %v2861_v17 = vpop.f32.mrb[4].mxu1 }
 0x59e   : > { %v1924_v18 = vpop.f32.mrb[5].mxu1 }
 0x59f   : > { %v1018_v20 = vpop.f32.mrb[6].mxu1 }
 0x5a0   : > { %v1925_v21 = vpop.f32.mrb[7].mxu1 }
 0x5a5   : > { %v1070_v22 = vpop.f32.mrb[8].mxu1 }
 0x5a6   : > { %v1071_v23 = vadd.f32 %v1823_v52, %v1070_v22  ;;  %v1930_v24 = vpop.f32.mrb[9].mxu1 }
 0x5a7   : > { %v1073_v25 = vpop.f32.mrb[10].mxu1  ;;  %v1832_v24 = vld [vmem:[#allocation14] ss:$0 sm:$0xff] }
 0x5a8   : > { %v1931_v27 = vpop.f32.mrb[11].mxu1  ;;  %v1076_v28 = vsel %vm966_vm8, %v1071_v23, -inf }
 0x5a9   : > { %1077 = vmax.xlane.f32.xlu1 %v1076_v28 }
 0x5ad   : > { %1295 = vmax.xlane.f32.xlu1 %v1294_v29 }
 0x5b1   : > { %1192 = vadd.xlane.f32.xlu1 %v1191_v31  ;;  %v2148_v31 = vld [vmem:[%s3002_s12] sm:$0xff]  }
 0x636   : > { %v1078_v34 = vpop.xlane.xlu1 %1077 }
 0x637   : > { %v1079_v35 = vsub.f32 %v1071_v23, %v1078_v34  ;;  %v2150_v34 = vld [vmem:[%s3002_s12 + $0x10] sm:$0xff]  }
 0x639   : > { %v1080_v36 = vmul.f32 1.442695, %v1079_v35  ;;  %v2151_v35 = vld [vmem:[%s3002_s12 + $0x18] sm:$0xff]  }
 0x63a   : > { %v1296_v37 = vpop.xlane.xlu1 %1295 }
 0x63b   : > { %2156 = vpow2.f32 %v1080_v36  ;;  %v1297_v38 = vsub.f32 %v1289_v26, %v1296_v37 }
 0x63d   : > { %v1298_v39 = vmul.f32 1.442695, %v1297_v38 }
 0x63e   : > { %v1193_v49 = vpop.xlane.xlu1 %1192 }
 0x63f   : > { %2158 = vpow2.f32 %v1298_v39 }
 0x645   : > { %v2157_v40 = vpop.eup %2156 }
 0x646   : > { %v1082_v41 = vsel %vm966_vm8, %v2157_v40, 0.0  ;;  %v1085_v42 = vpack.c.bf16 %v2157_v40, %v2157_v40 }
 0x647   : > { %1083 = vadd.xlane.f32.xlu1 %v1082_v41 }
 0x648   : > { %1935 = vmatmul.mubr.msk.bf16.vlgmr.msra.gmra.mrb[12].mxu1 %vm966_vm8, %v1085_v42 }
 0x649   : > { %v2159_v44 = vpop.eup %2158  ;;  %1945 = vmatpush3.bf16.msra.mxu1 %v1196_v43  ;;  %1946 = vmatprep.mubr.msk.bf16.mxu1 %vm2466_vm4, %v2465_v33 }
 0x64a   : > { %v1300_v45 = vsel %vm966_vm8, %v2159_v44, 0.0  ;;  %1956 = vmatprep.subr.bf16.mxu1 %v2465_v33  ;;  %v1303_v48 = vpack.c.bf16 %v2159_v44, %v2159_v44 }
 0x64b   : > { %1301 = vadd.xlane.f32.xlu1 %v1300_v45 }
 0x650   : > { %1947 = vmatmul.mubr.msk.bf16.vlgmr.msra.gmra.mrb[16].mxu1 %vm966_vm8, %v1194_v46 }
 0x651   : > { %1957 = vmatpush3.bf16.msra.mxu1 %v1305_v47  ;;  %1958 = vmatprep.mubr.msk.bf16.mxu1 %vm2466_vm4, %v2465_v33  ;;  %v1840_v47 = vld [vmem:[%s3055_s20] ss:$0 sm:$0xff]  ;;  %s2473_s20 = smov [#allocation16]  }
 0x652   : > { %1970 = vmatprep.subr.bf16.mxu1 %v2465_v33 }
 0x658   : > { %1959 = vmatmul.mubr.msk.bf16.vlgmr.msra.gmra.mrb[20].mxu1 %vm966_vm8, %v1303_v48 }
 0x659   : > { %1974 = vmatprep.mubr.msk.bf16.mxu1 %vm2466_vm4, %v2465_v33  ;;  %1971 = vmatpush3.bf16.msra.mxu1 %v2146_v8 }
 0x65a   : > { %1972 = vmatprep.subr.bf16.mxu1 %v2465_v33 }
 0x6d4   : > { %v1084_v50 = vpop.xlane.xlu1 %1083 }
 0x6d5   : > { %2160 = vrcp.f32 %v1084_v50 }
 0x6d6   : > { %2162 = vrcp.f32 %v1193_v49 }
 0x6d8   : > { %v1302_v56 = vpop.xlane.xlu1 %1301 }
 0x6d9   : > { %2164 = vrcp.f32 %v1302_v56 }
 0x6da   : > { %2166 = vrcp.f32 %v975_v12 }
 0x6df   : > { %v2161_v51 = vpop.eup %2160 }
 0x6e0   : > { %v2163_v59 = vpop.eup %2162 }
 0x6e3   : > { %v2165_v4 = vpop.eup %2164 }
 0x6e4   : > { %v2167_v13 = vpop.eup %2166 }
 0x6e5   : > { %v1023_v14 = vmul.f32 %v2167_v13, %v2861_v17  ;;  %v2147_v17 = vld [vmem:[%s3000_s10 + $0x8] sm:$0xff]  }
 0x6e6   : > { %1973 = vmatpush3.bf16.msra.mxu1 %v2147_v17 }
 0x6e7   : > { %v1024_v16 = vpack.c.bf16 %v1023_v14, %v1023_v14 }
 0x71b   : > { %v1125_v52 = vpop.f32.mrb[12].mxu1 }
 0x71c   : > { %v1133_v53 = vmul.f32 %v2161_v51, %v1125_v52  ;;  %v1936_v54 = vpop.f32.mrb[13].mxu1 }
 0x71d   : > { %v1128_v55 = vpop.f32.mrb[14].mxu1 }
 0x71e   : > { %v1134_v57 = vpack.c.bf16 %v1133_v53, %v1133_v53  ;;  %v1937_v58 = vpop.f32.mrb[15].mxu1 }
 0x720   : > { %1354 = vrot.lane.b32.xlu1 %v1134_v57, %s2470_s18  ;;  %s3054_s18 = sld [smem:[#allocation36_spill]] }
 0x723   : > { %v1234_v60 = vpop.f32.mrb[16].mxu1 }
 0x724   : > { %v1242_v61 = vmul.f32 %v2163_v59, %v1234_v60  ;;  %v1948_v62 = vpop.f32.mrb[17].mxu1 }
 0x725   : > { %v1237_v0 = vpop.f32.mrb[18].mxu1 }
 0x726   : > { %v1243_v1 = vpack.c.bf16 %v1242_v61, %v1242_v61  ;;  %v1949_v2 = vpop.f32.mrb[19].mxu1  ;;  %v1836_v36 = vld [vmem:[%s3054_s18] ss:$0 sm:$0xff] }
 0x727   : > { %v1846_v0 = vld [vmem:[%s3057_s21] ss:$0 sm:$0xff] }
 0x728   : > { %1357 = vrot.lane.b32.xlu0 %v1243_v1, %s2471_s26  ;;  %v1847_v2 = vld [vmem:[%s3058_s11] ss:$0 sm:$0xff] }
 0x72b   : > { %v1343_v5 = vpop.f32.mrb[20].mxu1 }
 0x72c   : > { %v1351_v6 = vmul.f32 %v2165_v4, %v1343_v5  ;;  %v1960_v7 = vpop.f32.mrb[21].mxu1 }
 0x72d   : > { %v1346_v9 = vpop.f32.mrb[22].mxu1 }
 0x72e   : > { %v1352_v10 = vpack.c.bf16 %v1351_v6, %v1351_v6  ;;  %v1961_v11 = vpop.f32.mrb[23].mxu1 }
 0x730   : > { %1360 = vrot.lane.b32.xlu1 %v1352_v10, %s2472_s13  ;;  %s1849_s13 = sshll.u32 %s2438_s25, 1  ;;  %s3059_s25 = sld [smem:[#allocation40_spill]] }
 0x731   : > { %s1640_s14 = sadd.s32 %s2434_s24, %s1849_s13  ;;  %s1629_s24 = scalar_lea.sflag [#allocation7], %s617_s16 }
 0x732   : > { %s1850_s27 = sshll.u32 %s1640_s14, 7  ;;  %s2344_s13 = sshll.u32 %s2473_s20, 4  ;;  %s2345_s13 = int_to_ptr.vmem [resolvable:$false] %s2344_s13 }
 0x733   : > { %s2346_s14 = scalar_lea.vmem %s2345_s13, 256  ;;  %p2347_p5 = scmp.lt.s32.totalorder %s2934_s17, %s2345_s13 }
 0x734   : > { %p2348_p6 = scmp.lt.s32.totalorder %s2346_s14, %s2340_s30 }
 0x736   : > { %s3060_s18 = smov %s3059_s25  ;;  %s2932_s26 = scalar_lea.hbm %s3059_s25, %s1850_s27 }
 0x737   : > { %p2349_p7 = por %p2348_p6, %p2347_p5 }
 0x739   : > { %p2350_p9 = pnand %p2349_p7, %p2343_p4 }
 0x792   : > { %v1355_v15 = vpop.permute.xlu1 %1354 }
 0x793   : > { %v1364_v19 = vsel %vm918_vm7, %v1024_v16, %v1355_v15 }
 0x79a   : > { %v1358_v18 = vpop.permute.xlu0 %1357 }
 0x79b   : > { %v1366_v20 = vsel %vm966_vm8, %v1364_v19, %v1358_v18 }
 0x7a2   : > { %v1361_v21 = vpop.permute.xlu1 %1360 }
 0x7a3   : > { %v1369_v22 = vsel %vm1367_vm9, %v1366_v20, %v1361_v21 }
 0x7a4   : > { %1372 = vst.msk [vmem:[#allocation4] sm:$0xf] %vm1371_vm10, %v1369_v22 }
 0x7ab   : > { %v1373_v23 = vld [vmem:[#allocation4] sm:$0xf] }
 0x7ac   : > { %1967 = vmatmul.mubr.msk.bf16.vlgmr.msra.gmra.mrb[12].mxu0 %vm864_vm5, %v1373_v23 }
 0x7ad   : > { %1986 = vmatprep.mubr.msk.bf16.mxu0 %vm2466_vm4, %v2465_v33  ;;  %1979 = vmatpush3.bf16.msra.mxu0 %v2148_v31 }
 0x7ae   : > { %1980 = vmatprep.subr.bf16.mxu0 %v2465_v33 }
 0x7b1   : > { %1981 = vmatpush3.bf16.msra.mxu0 %v2149_v32 }
 0x7b2   : > { %1982 = vmatprep.subr.bf16.mxu0 %v2465_v33 }
 0x7b5   : > { %1983 = vmatpush3.bf16.msra.mxu0 %v2150_v34 }
 0x7b6   : > { %1984 = vmatprep.subr.bf16.mxu0 %v2465_v33 }
 0x7b9   : > { %1985 = vmatpush3.bf16.msra.mxu0 %v2151_v35 }
 0x87f   : > { %v1434_v25 = vpop.f32.mrb[12].mxu0 }
 0x880   : > { %v1435_v26 = vadd.f32 %v1832_v24, %v1434_v25  ;;  %v1968_v27 = vpop.f32.mrb[13].mxu0 }
 0x881   : > { %v1437_v28 = vpop.f32.mrb[14].mxu0 }
 0x882   : > { %v1440_v29 = vpack.c.bf16 %v1435_v26, %v1435_v26  ;;  %v1969_v30 = vpop.f32.mrb[15].mxu0 }
 0x884   : > { %1975 = vmatmul.mubr.msk.bf16.vlgmr.msra.gmra.mrb[24].mxu1 %vm864_vm5, %v1440_v29 }
 0x957   : > { %v1501_v37 = vpop.f32.mrb[24].mxu1 }
 0x958   : > { %v1502_v38 = vadd.f32 %v1836_v36, %v1501_v37  ;;  %v1976_v39 = vpop.f32.mrb[25].mxu1 }
 0x959   : > { %v1504_v40 = vpop.f32.mrb[26].mxu1 }
 0x95a   : > { %v1508_v41 = vmul.f32 0.70710677, %v1502_v38  ;;  %v1977_v42 = vpop.f32.mrb[27].mxu1  ;;  %v1507_v44 = vmul.f32 0.5, %v1502_v38 }
 0x95c   : > { %2168 = verf.f32 %v1508_v41 }
 0x966   : > { %v2169_v43 = vpop.eup %2168 }
 0x967   : > { %v1510_v45 = vadd.f32 1.0, %v2169_v43 }
 0x969   : > { %v1511_v33 = vmul.f32 %v1510_v45, %v1507_v44 }
 0x96b   : > { %v1512_v46 = vpack.c.bf16 %v1511_v33, %v1511_v33 }
 0x96d   : > { %1987 = vmatmul.mubr.msk.bf16.vlgmr.msra.gmra.mrb[16].mxu0 %vm1552_vm11, %v1512_v46 }
 0xa40   : > { %v1590_v48 = vpop.f32.mrb[16].mxu0 }
 0xa41   : > { %v1591_v49 = vadd.f32 %v1840_v47, %v1590_v48  ;;  %v1988_v50 = vpop.f32.mrb[17].mxu0 }
 0xa42   : > { %v1593_v51 = vpop.f32.mrb[18].mxu0 }
 0xa43   : > { %v1989_v52 = vpop.f32.mrb[19].mxu0  ;;  %v1596_v53 = vadd.f32 %v1591_v49, %v1435_v26 }
 0xa45   : > { %v1597_v54 = vsel %vm864_vm5, %v1596_v53, 0.0 }
 0xa46   : > { %1598 = vadd.xlane.f32.xlu1 %v1597_v54 }
 0xad3   : > { %v1599_v55 = vpop.xlane.xlu1 %1598 }
 0xad4   : > { %v1601_v56 = vmul.f32 0.03125, %v1599_v55 }
 0xad6   : > { %v1602_v57 = vsub.f32 %v1596_v53, %v1601_v56 }
 0xad8   : > { %v1603_v58 = vmul.f32 %v1602_v57, %v1602_v57 }
 0xada   : > { %v1604_v59 = vsel %vm864_vm5, %v1603_v58, 0.0 }
 0xadb   : > { %1605 = vadd.xlane.f32.xlu0 %v1604_v59 }
 0xb68   : > { %v1606_v60 = vpop.xlane.xlu0 %1605 }
 0xb69   : > { %v1607_v61 = vmul.f32 0.03125, %v1606_v60 }
 0xb6b   : > { %v1608_v62 = vadd.f32 1e-12, %v1607_v61 }
 0xb6d   : > { %2170 = vrsqrt.f32 %v1608_v62 }
 0xb77   : > { %v2171_v63 = vpop.eup %2170 }
 0xb78   : > { %v1610_v1 = vmul.f32 %v2171_v63, %v1602_v57 }
 0xb7a   : > { %v1618_v3 = vmul.f32 %v1846_v0, %v1610_v1 }
 0xb7c   : > { %v1626_v4 = vadd.f32 %v1847_v2, %v1618_v3 }
 0xb7e   : > { %1627 = vst.msk [vmem:[%s619_s29] sm:$0xff] %vm864_vm5, %v1626_v4 }
 0xb7f   : > { %2353 = shalt.err (!%p2350_p9)
}
 0xb80   : > { %s2354_s16 = scalar_lea.hbm %s2932_s26, 128  ;;  %s2358_s15 = scalar_lea.hbm %s3060_s18, 512 }
 0xb81   : > { %p2355_p11 = scmp.ne.s32.totalorder %s2932_s26, %s2354_s16  ;;  %p2359_p3 = scmp.lt.u32.totalorder %s2932_s26, %s3060_s18 }
 0xb82   : > { %p2360_p0 = scmp.lt.u32.totalorder %s2358_s15, %s2354_s16  ;;  %p2362_p8 = scmp.lt.u32.totalorder %s2354_s16, %s2932_s26 }
 0xb83   : > { %p2356_p13 = pnand %p2355_p11, %p3061_p10 }
 0xb84   : > { %p2361_p2 = por %p2360_p0, %p2359_p3 }
 0xb85   : > { %p2357_p1 = pneg %p2356_p13 }
 0xb86   : > { %p2363_p12 = por %p2362_p8, %p2361_p2 }
 0xb88   : > { %p2364_p4 = pnand %p2363_p12, %p2357_p1 }
 0xb8a   : > { %2367 = shalt.err (!%p2364_p4)
}
 0xb8b   : > { %2014 = dma.vmem_to_hbm [thread:$0]  (%p3061_p10), %s2934_s17, 128, %s2932_s26, %s1629_s24  }
 0xb8c PF: > { %s3062_s7 = sld [smem:[#allocation26_spill]]  ;;  %s3063_s5 = sld [smem:[#allocation22_spill]] }
 0xb8d   : > { %s3064_s11 = sld [smem:[#allocation30_spill]] }
 0xb92   : > { %p2051_p5 = scmp.ge.s32.totalorder %s3062_s7, 2  ;;  %s1656_s27 = sand.u32 1, %s3063_s5  }
 0xb93   : > { %p3065_p6 = scmp.ne.s32.totalorder %s3064_s11, 0  ;;  %s1657_s19 = scalar_lea.sflag [#allocation7], %s1656_s27 }
 0xb95   : > { %p2036_p7 = pnand %p2051_p5, %p3065_p6 }
 0xb97   : > { %2417 = dma.done.wait (!%p2036_p7), %s1657_s19, 128  }
 0xb98   : > { %2419 = vsyncadd (!%p2036_p7), %s1657_s19, 4294967168  ;;  %s33_s28 = sadd.s32 1, %s3062_s7   ;;  %s3066_s23 = sld [smem:[#allocation23_spill]] }
 0xb99   : > { %p30_p9 = scmp.ge.s32.totalorder %s33_s28, 6   ;;  %s3067_s25 = sld [smem:[#allocation31_spill]] }
 0xb9a   : > { %s3068_s24 = sld [smem:[#allocation24_spill]]  ;;  %s3069_s30 = sld [smem:[#allocation25_spill]] }
 0xb9b   : > { %s3070_s26 = sld [smem:[#allocation27_spill]]  ;;  %s3071_s27 = sld [smem:[#allocation29_spill]] }
 0xb9c   : > { %s3072_s21 = smov %s2426_s22  ;;  %32 = sbr.rel (!%p30_p9) target bundleno = 19 (0x13), region = 164 }
 0xb9e   : > { %s3073_s22 = smov %s3066_s23 }
 0xb9f   : > { %s3074_s23 = smov %s3067_s25 }
 0xba0   : > { %s3075_s25 = smov %s3069_s30 }
 0xba3   :  { %1662 = vsyncpa [#allocation6], 1 }
 0xba4   :  { %1664 = vsyncpa [#allocation6 + $0x1], 1 }
 0xba5   :  { %1665 = vsyncpa [#allocation9], 1 }
 0xba6   :  { %1666 = vsyncpa [#allocation12], 1 }
 0xba7   :  { %1667 = vsyncpa [#allocation15], 1 }
 0xba8   :  { %1668 = vsyncpa [#allocation7], 1 }
 0xba9   :  { %1670 = vsyncpa [#allocation7 + $0x1], 1 }

</bundles_post_ra>
